<compile_context>
chip_gen: v7x
topology: tpu7x:2x2x1
jax: 0.10.0
libtpu: 0.0.40
codegen_flags: <defaults>
</compile_context>

<pallas_src>
import functools

import jax
import jax.numpy as jnp
from jax import lax
from jax.experimental import pallas as pl
from jax.experimental.pallas import tpu as pltpu


def _lstm_ts_kernel(x_ref, wih_ref, whh_ref, slab_ref, out_ref, gx_ref,
                    *, T, B, H, r_w1, r_b1, r_w2, r_b2):
    """LSTM recurrence + fc1/tanh/fc2 head.  Gate-planar: no lane slicing."""
    f32 = jnp.float32
    x = x_ref[...]                                             # (T*B, I)

    # Hoisted per-gate input projections (off the serial chain):
    #   gx[k] = x @ Wih_k^T + (b_ih + b_hh)_k   for k in (i, f, g, o).
    for k in range(4):
        b_k = slab_ref[8 * k:8 * k + 1, 0:H]                   # (1, H)
        gx_ref[k] = (jnp.dot(x, wih_ref[k], preferred_element_type=f32)
                     + b_k)                                    # (T*B, H)

    def gate(k, t, h):
        # Sublane-aligned view of the hoisted projection; the per-gate
        # recurrent matmul result also lands at lane offset 0, so the whole
        # per-step elementwise tail is relayout-free.
        g = gx_ref[k, t * B:(t + 1) * B, :]                    # (B, H)
        if h is None:                                          # step 0: h0 = 0
            return g
        return g + jnp.dot(h, whh_ref[k], preferred_element_type=f32)

    # Step 0 (h0 = c0 = 0, PyTorch default): no recurrent matmul, no f*c term.
    i_s = jax.nn.sigmoid(gate(0, 0, None))
    g_v = jnp.tanh(gate(2, 0, None))
    o_s = jax.nn.sigmoid(gate(3, 0, None))
    c = i_s * g_v
    h = o_s * jnp.tanh(c)

    # Remaining steps, fully unrolled (T is a small compile-time constant).
    # TODO(synk): for large T switch to lax.fori_loop(..., unroll=8) with
    # gx_ref[k, pl.ds(pl.multiple_of(t * B, 8), B), :] to bound live ranges.
    for t in range(1, T):
        i_s = jax.nn.sigmoid(gate(0, t, h))
        f_s = jax.nn.sigmoid(gate(1, t, h))
        g_v = jnp.tanh(gate(2, t, h))
        o_s = jax.nn.sigmoid(gate(3, t, h))
        c = f_s * c + i_s * g_v
        h = o_s * jnp.tanh(c)

    # Head: fc2(tanh(fc1(h_T))), emitted lane-dense as (1, B) (batch on lanes)
    # so the store is a dense vst instead of per-row masked partial stores.
    w1 = slab_ref[r_w1:r_w1 + H, 0:16]                         # (H, 16)
    b1 = slab_ref[r_b1:r_b1 + 1, 0:16]                         # (1, 16)
    w2 = slab_ref[r_w2:r_w2 + 1, 0:16]                         # (1, 16)
    b2 = slab_ref[r_b2:r_b2 + 1, 0:1]                          # (1, 1)
    z1 = jnp.tanh(jnp.dot(h, w1, preferred_element_type=f32) + b1)   # (B, 16)
    # (1,16) x (B,16) contracted on the 16-dim -> (1, B): trans-B MXU matmul.
    out = lax.dot_general(w2, z1, (((1,), (1,)), ((), ())),
                          preferred_element_type=f32) + b2     # (1, B)
    out_ref[...] = out.astype(out_ref.dtype)


def lstm_ts_forward(x, params):
    """x: (B, T, I) float32, batch_first like the PyTorch module."""
    B, T, I = x.shape
    H = params["w_hh"].shape[1]                 # w_hh: (4H, H), PyTorch layout

    # Pad the batch to a sublane multiple so every per-step gx row slice in
    # the kernel is an aligned, copy-free view.
    Bp = ((B + 7) // 8) * 8
    if Bp != B:
        x = jnp.pad(x, ((0, Bp - B), (0, 0), (0, 0)))

    # Time-major, flattened: one hoisted (T*B, I) @ (I, H) matmul per gate.
    x2d = jnp.transpose(x, (1, 0, 2)).reshape(T * Bp, I).astype(jnp.float32)
    # TODO(synk): at scale cast x2d / wih to bf16 for the hoisted projection
    # only (keep preferred_element_type=f32 and the recurrence in f32).

    # Gate-planar weights (PyTorch gate order i, f, g, o along the 4H axis).
    wih = jnp.transpose(params["w_ih"].reshape(4, H, I), (0, 2, 1))  # (4, I, H)
    whh = jnp.transpose(params["w_hh"].reshape(4, H, H), (0, 2, 1))  # (4, H, H)

    # Small-parameter slab: LSTM biases + fc1/fc2 params in one array (one
    # HBM->VMEM DMA instead of five); every field starts at a sublane-multiple
    # row and lane 0 so all kernel-side views are aligned.
    slab_w = max(H, 16)
    r_w1 = 4 * 8                                 # after 4 bias rows (8-strided)
    r_b1 = r_w1 + ((H + 7) // 8) * 8
    r_w2 = r_b1 + 8
    r_b2 = r_w2 + 8
    n_rows = r_b2 + 8
    b_all = (params["b_ih"] + params["b_hh"]).reshape(4, H)
    slab = jnp.zeros((n_rows, slab_w), jnp.float32)
    for k in range(4):
        slab = slab.at[8 * k, :H].set(b_all[k])
    slab = slab.at[r_w1:r_w1 + H, :16].set(jnp.transpose(params["w1"]))
    slab = slab.at[r_b1, :16].set(params["b1"])
    slab = slab.at[r_w2, :16].set(params["w2"].reshape(-1))
    slab = slab.at[r_b2, 0].set(params["b2"][0])

    inputs = (x2d, wih, whh, slab)

    def full_spec(a):
        n = a.ndim
        return pl.BlockSpec(a.shape, lambda i, n=n: (0,) * n)

    kernel = functools.partial(_lstm_ts_kernel, T=T, B=Bp, H=H,
                               r_w1=r_w1, r_b1=r_b1, r_w2=r_w2, r_b2=r_b2)

    # TODO(synk): at large B add a "parallel" batch grid axis (2 TCs on v7x);
    # at large T stream gx over a T grid axis and set vmem_limit_bytes
    # explicitly (64 MiB physical ceiling on v7x vs 128 MiB on v5e/v6e).
    grid_spec = pltpu.PrefetchScalarGridSpec(
        num_scalar_prefetch=0,
        grid=(1,),
        in_specs=[full_spec(a) for a in inputs],
        out_specs=pl.BlockSpec((1, Bp), lambda i: (0, 0)),
        scratch_shapes=[pltpu.VMEM((4, T * Bp, H), jnp.float32)],
    )

    out = pl.pallas_call(
        kernel,
        out_shape=jax.ShapeDtypeStruct((1, Bp), jnp.float32),
        grid_spec=grid_spec,
        compiler_params=pltpu.CompilerParams(
            dimension_semantics=("arbitrary",)),
    )(*inputs)

    # Lane-dense (1, Bp) -> module's (B, 1).
    return out[0, :B].reshape(B, 1)


def init_params(key, input_size, hidden_size):
    """Deterministic init mirroring the shapes of nn.LSTM / nn.Linear."""
    ks = jax.random.split(key, 8)
    s_lstm = 1.0 / jnp.sqrt(hidden_size)
    s_fc1 = 1.0 / jnp.sqrt(hidden_size)
    s_fc2 = 1.0 / jnp.sqrt(16.0)
    u = lambda k, shape, s: jax.random.uniform(
        k, shape, jnp.float32, minval=-s, maxval=s)
    return {
        "w_ih": u(ks[0], (4 * hidden_size, input_size), s_lstm),
        "w_hh": u(ks[1], (4 * hidden_size, hidden_size), s_lstm),
        "b_ih": u(ks[2], (4 * hidden_size,), s_lstm),
        "b_hh": u(ks[3], (4 * hidden_size,), s_lstm),
        "w1":   u(ks[4], (16, hidden_size), s_fc1),
        "b1":   u(ks[5], (16,), s_fc1),
        "w2":   u(ks[6], (1, 16), s_fc2),
        "b2":   u(ks[7], (1,), s_fc2),
    }


def reference_forward(x, params):
    """Pure-JAX reference of the PyTorch forward for correctness checking."""
    B, T, I = x.shape
    H = params["w_hh"].shape[1]
    h = jnp.zeros((B, H), jnp.float32)
    c = jnp.zeros((B, H), jnp.float32)
    for t in range(T):
        gates = (x[:, t, :] @ params["w_ih"].T + h @ params["w_hh"].T
                 + params["b_ih"] + params["b_hh"])
        i_g = jax.nn.sigmoid(gates[:, 0 * H:1 * H])
        f_g = jax.nn.sigmoid(gates[:, 1 * H:2 * H])
        g_g = jnp.tanh(gates[:, 2 * H:3 * H])
        o_g = jax.nn.sigmoid(gates[:, 3 * H:4 * H])
        c = f_g * c + i_g * g_g
        h = o_g * jnp.tanh(c)
    z1 = jnp.tanh(h @ params["w1"].T + params["b1"])
    return z1 @ params["w2"].T + params["b2"]


if __name__ == "__main__":
    # Small shapes consistent with LSTM_TS(input_size, batch_size, hidden_size, time_step)
    batch_size, time_step, input_size, hidden_size = 8, 8, 16, 32

    key = jax.random.PRNGKey(0)
    kx, kp = jax.random.split(key)
    x = jax.random.normal(kx, (batch_size, time_step, input_size), jnp.float32)
    params = init_params(kp, input_size, hidden_size)

    pred = lstm_ts_forward(x, params)
    jax.block_until_ready(pred)

    ref = reference_forward(x, params)
    assert pred.shape == (batch_size, 1)
    # Exact gate math (real tanh for the cell gate) -> tight tolerance.
    assert jnp.allclose(pred, ref, atol=1e-4, rtol=1e-4), (
        f"max abs err {jnp.max(jnp.abs(pred - ref))}")

    print("KERNEL_OK")
</pallas_src>

<mosaic_0001>
module attributes {stable_mosaic.version = 11 : i64} {
  func.func @_lstm_ts_kernel(%arg0: i32, %arg1: memref<64x16xf32, #tpu.memory_space<vmem>>, %arg2: memref<4x16x32xf32, #tpu.memory_space<vmem>>, %arg3: memref<4x32x32xf32, #tpu.memory_space<vmem>>, %arg4: memref<88x32xf32, #tpu.memory_space<vmem>>, %arg5: memref<1x8xf32, #tpu.memory_space<vmem>>, %arg6: memref<4x64x32xf32, #tpu.memory_space<vmem>>) attributes {dimension_semantics = [#tpu.dimension_semantics<arbitrary>], iteration_bounds = array<i64: 1>, scalar_prefetch = 0 : i64, scratch_operands = 1 : i64, tpu.core_type = #tpu.core_type<tc>, window_params = [{pipeline_mode = #tpu.pipeline_mode<synchronous>, transform_indices = @transform_0, window_bounds = array<i64: 64, 16>}, {pipeline_mode = #tpu.pipeline_mode<synchronous>, transform_indices = @transform_1, window_bounds = array<i64: 4, 16, 32>}, {pipeline_mode = #tpu.pipeline_mode<synchronous>, transform_indices = @transform_2, window_bounds = array<i64: 4, 32, 32>}, {pipeline_mode = #tpu.pipeline_mode<synchronous>, transform_indices = @transform_3, window_bounds = array<i64: 88, 32>}, {pipeline_mode = #tpu.pipeline_mode<synchronous>, transform_indices = @transform_4, window_bounds = array<i64: 1, 8>}]} {
    %c0 = arith.constant 0 : index
    %c0_0 = arith.constant 0 : index
    %0 = vector.load %arg1[%c0, %c0_0] : memref<64x16xf32, #tpu.memory_space<vmem>>, vector<64x16xf32>
    %c0_1 = arith.constant 0 : index
    %c0_2 = arith.constant 0 : index
    %1 = vector.load %arg4[%c0_1, %c0_2] : memref<88x32xf32, #tpu.memory_space<vmem>>, vector<1x32xf32>
    %c0_3 = arith.constant 0 : index
    %c0_4 = arith.constant 0 : index
    %c0_5 = arith.constant 0 : index
    %2 = vector.load %arg2[%c0_3, %c0_4, %c0_5] : memref<4x16x32xf32, #tpu.memory_space<vmem>>, vector<1x16x32xf32>
    %3 = vector.shape_cast %2 : vector<1x16x32xf32> to vector<16x32xf32>
    %cst = arith.constant dense<0.000000e+00> : vector<64x32xf32>
    %4 = tpu.matmul %0, %3, %cst {dimension_numbers = #tpu.dot_dimension_numbers<[1], [0], [0], [1], [0, 0, 1, 1], [], []>} : vector<64x16xf32>, vector<16x32xf32>, vector<64x32xf32> -> vector<64x32xf32>
    %5 = vector.broadcast %1 : vector<1x32xf32> to vector<64x32xf32>
    %6 = arith.addf %4, %5 : vector<64x32xf32>
    %c0_6 = arith.constant 0 : index
    %c0_7 = arith.constant 0 : index
    %c0_8 = arith.constant 0 : index
    %7 = vector.load %arg6[%c0_6, %c0_7, %c0_8] : memref<4x64x32xf32, #tpu.memory_space<vmem>>, vector<1x64x32xf32>
    %8 = vector.shape_cast %7 : vector<1x64x32xf32> to vector<64x32xf32>
    %9 = vector.shape_cast %6 : vector<64x32xf32> to vector<1x64x32xf32>
    tpu.vector_store %arg6[%c0_6, %c0_7, %c0_8], %9 {strides = array<i32>} : memref<4x64x32xf32, #tpu.memory_space<vmem>>, vector<1x64x32xf32>,
    %c8 = arith.constant 8 : index
    %c0_9 = arith.constant 0 : index
    %10 = vector.load %arg4[%c8, %c0_9] : memref<88x32xf32, #tpu.memory_space<vmem>>, vector<1x32xf32>
    %c1 = arith.constant 1 : index
    %c0_10 = arith.constant 0 : index
    %c0_11 = arith.constant 0 : index
    %11 = vector.load %arg2[%c1, %c0_10, %c0_11] : memref<4x16x32xf32, #tpu.memory_space<vmem>>, vector<1x16x32xf32>
    %12 = vector.shape_cast %11 : vector<1x16x32xf32> to vector<16x32xf32>
    %cst_12 = arith.constant dense<0.000000e+00> : vector<64x32xf32>
    %13 = tpu.matmul %0, %12, %cst_12 {dimension_numbers = #tpu.dot_dimension_numbers<[1], [0], [0], [1], [0, 0, 1, 1], [], []>} : vector<64x16xf32>, vector<16x32xf32>, vector<64x32xf32> -> vector<64x32xf32>
    %14 = vector.broadcast %10 : vector<1x32xf32> to vector<64x32xf32>
    %15 = arith.addf %13, %14 : vector<64x32xf32>
    %c1_13 = arith.constant 1 : index
    %c0_14 = arith.constant 0 : index
    %c0_15 = arith.constant 0 : index
    %16 = vector.load %arg6[%c1_13, %c0_14, %c0_15] : memref<4x64x32xf32, #tpu.memory_space<vmem>>, vector<1x64x32xf32>
    %17 = vector.shape_cast %16 : vector<1x64x32xf32> to vector<64x32xf32>
    %18 = vector.shape_cast %15 : vector<64x32xf32> to vector<1x64x32xf32>
    tpu.vector_store %arg6[%c1_13, %c0_14, %c0_15], %18 {strides = array<i32>} : memref<4x64x32xf32, #tpu.memory_space<vmem>>, vector<1x64x32xf32>,
    %c16 = arith.constant 16 : index
    %c0_16 = arith.constant 0 : index
    %19 = vector.load %arg4[%c16, %c0_16] : memref<88x32xf32, #tpu.memory_space<vmem>>, vector<1x32xf32>
    %c2 = arith.constant 2 : index
    %c0_17 = arith.constant 0 : index
    %c0_18 = arith.constant 0 : index
    %20 = vector.load %arg2[%c2, %c0_17, %c0_18] : memref<4x16x32xf32, #tpu.memory_space<vmem>>, vector<1x16x32xf32>
    %21 = vector.shape_cast %20 : vector<1x16x32xf32> to vector<16x32xf32>
    %cst_19 = arith.constant dense<0.000000e+00> : vector<64x32xf32>
    %22 = tpu.matmul %0, %21, %cst_19 {dimension_numbers = #tpu.dot_dimension_numbers<[1], [0], [0], [1], [0, 0, 1, 1], [], []>} : vector<64x16xf32>, vector<16x32xf32>, vector<64x32xf32> -> vector<64x32xf32>
    %23 = vector.broadcast %19 : vector<1x32xf32> to vector<64x32xf32>
    %24 = arith.addf %22, %23 : vector<64x32xf32>
    %c2_20 = arith.constant 2 : index
    %c0_21 = arith.constant 0 : index
    %c0_22 = arith.constant 0 : index
    %25 = vector.load %arg6[%c2_20, %c0_21, %c0_22] : memref<4x64x32xf32, #tpu.memory_space<vmem>>, vector<1x64x32xf32>
    %26 = vector.shape_cast %25 : vector<1x64x32xf32> to vector<64x32xf32>
    %27 = vector.shape_cast %24 : vector<64x32xf32> to vector<1x64x32xf32>
    tpu.vector_store %arg6[%c2_20, %c0_21, %c0_22], %27 {strides = array<i32>} : memref<4x64x32xf32, #tpu.memory_space<vmem>>, vector<1x64x32xf32>,
    %c24 = arith.constant 24 : index
    %c0_23 = arith.constant 0 : index
    %28 = vector.load %arg4[%c24, %c0_23] : memref<88x32xf32, #tpu.memory_space<vmem>>, vector<1x32xf32>
    %c3 = arith.constant 3 : index
    %c0_24 = arith.constant 0 : index
    %c0_25 = arith.constant 0 : index
    %29 = vector.load %arg2[%c3, %c0_24, %c0_25] : memref<4x16x32xf32, #tpu.memory_space<vmem>>, vector<1x16x32xf32>
    %30 = vector.shape_cast %29 : vector<1x16x32xf32> to vector<16x32xf32>
    %cst_26 = arith.constant dense<0.000000e+00> : vector<64x32xf32>
    %31 = tpu.matmul %0, %30, %cst_26 {dimension_numbers = #tpu.dot_dimension_numbers<[1], [0], [0], [1], [0, 0, 1, 1], [], []>} : vector<64x16xf32>, vector<16x32xf32>, vector<64x32xf32> -> vector<64x32xf32>
    %32 = vector.broadcast %28 : vector<1x32xf32> to vector<64x32xf32>
    %33 = arith.addf %31, %32 : vector<64x32xf32>
    %c3_27 = arith.constant 3 : index
    %c0_28 = arith.constant 0 : index
    %c0_29 = arith.constant 0 : index
    %34 = vector.load %arg6[%c3_27, %c0_28, %c0_29] : memref<4x64x32xf32, #tpu.memory_space<vmem>>, vector<1x64x32xf32>
    %35 = vector.shape_cast %34 : vector<1x64x32xf32> to vector<64x32xf32>
    %36 = vector.shape_cast %33 : vector<64x32xf32> to vector<1x64x32xf32>
    tpu.vector_store %arg6[%c3_27, %c0_28, %c0_29], %36 {strides = array<i32>} : memref<4x64x32xf32, #tpu.memory_space<vmem>>, vector<1x64x32xf32>,
    %c0_30 = arith.constant 0 : index
    %c0_31 = arith.constant 0 : index
    %c0_32 = arith.constant 0 : index
    %37 = vector.load %arg6[%c0_30, %c0_31, %c0_32] : memref<4x64x32xf32, #tpu.memory_space<vmem>>, vector<1x8x32xf32>
    %38 = vector.shape_cast %37 : vector<1x8x32xf32> to vector<8x32xf32>
    %39 = arith.negf %38 : vector<8x32xf32>
    %40 = math.exp %39 : vector<8x32xf32>
    %cst_33 = arith.constant 1.000000e+00 : f32
    %41 = vector.broadcast %cst_33 : f32 to vector<8x32xf32>
    %42 = arith.addf %41, %40 : vector<8x32xf32>
    %43 = arith.divf %41, %42 : vector<8x32xf32>
    %c2_34 = arith.constant 2 : index
    %c0_35 = arith.constant 0 : index
    %c0_36 = arith.constant 0 : index
    %44 = vector.load %arg6[%c2_34, %c0_35, %c0_36] : memref<4x64x32xf32, #tpu.memory_space<vmem>>, vector<1x8x32xf32>
    %45 = vector.shape_cast %44 : vector<1x8x32xf32> to vector<8x32xf32>
    %46 = math.tanh %45 : vector<8x32xf32>
    %c3_37 = arith.constant 3 : index
    %c0_38 = arith.constant 0 : index
    %c0_39 = arith.constant 0 : index
    %47 = vector.load %arg6[%c3_37, %c0_38, %c0_39] : memref<4x64x32xf32, #tpu.memory_space<vmem>>, vector<1x8x32xf32>
    %48 = vector.shape_cast %47 : vector<1x8x32xf32> to vector<8x32xf32>
    %49 = arith.negf %48 : vector<8x32xf32>
    %50 = math.exp %49 : vector<8x32xf32>
    %cst_40 = arith.constant 1.000000e+00 : f32
    %51 = vector.broadcast %cst_40 : f32 to vector<8x32xf32>
    %52 = arith.addf %51, %50 : vector<8x32xf32>
    %53 = arith.divf %51, %52 : vector<8x32xf32>
    %54 = arith.mulf %43, %46 : vector<8x32xf32>
    %55 = math.tanh %54 : vector<8x32xf32>
    %56 = arith.mulf %53, %55 : vector<8x32xf32>
    %c0_41 = arith.constant 0 : index
    %c8_42 = arith.constant 8 : index
    %c0_43 = arith.constant 0 : index
    %57 = vector.load %arg6[%c0_41, %c8_42, %c0_43] : memref<4x64x32xf32, #tpu.memory_space<vmem>>, vector<1x8x32xf32>
    %58 = vector.shape_cast %57 : vector<1x8x32xf32> to vector<8x32xf32>
    %c0_44 = arith.constant 0 : index
    %c0_45 = arith.constant 0 : index
    %c0_46 = arith.constant 0 : index
    %59 = vector.load %arg3[%c0_44, %c0_45, %c0_46] : memref<4x32x32xf32, #tpu.memory_space<vmem>>, vector<1x32x32xf32>
    %60 = vector.shape_cast %59 : vector<1x32x32xf32> to vector<32x32xf32>
    %cst_47 = arith.constant dense<0.000000e+00> : vector<8x32xf32>
    %61 = tpu.matmul %56, %60, %cst_47 {dimension_numbers = #tpu.dot_dimension_numbers<[1], [0], [0], [1], [0, 0, 1, 1], [], []>} : vector<8x32xf32>, vector<32x32xf32>, vector<8x32xf32> -> vector<8x32xf32>
    %62 = arith.addf %58, %61 : vector<8x32xf32>
    %63 = arith.negf %62 : vector<8x32xf32>
    %64 = math.exp %63 : vector<8x32xf32>
    %cst_48 = arith.constant 1.000000e+00 : f32
    %65 = vector.broadcast %cst_48 : f32 to vector<8x32xf32>
    %66 = arith.addf %65, %64 : vector<8x32xf32>
    %67 = arith.divf %65, %66 : vector<8x32xf32>
    %c1_49 = arith.constant 1 : index
    %c8_50 = arith.constant 8 : index
    %c0_51 = arith.constant 0 : index
    %68 = vector.load %arg6[%c1_49, %c8_50, %c0_51] : memref<4x64x32xf32, #tpu.memory_space<vmem>>, vector<1x8x32xf32>
    %69 = vector.shape_cast %68 : vector<1x8x32xf32> to vector<8x32xf32>
    %c1_52 = arith.constant 1 : index
    %c0_53 = arith.constant 0 : index
    %c0_54 = arith.constant 0 : index
    %70 = vector.load %arg3[%c1_52, %c0_53, %c0_54] : memref<4x32x32xf32, #tpu.memory_space<vmem>>, vector<1x32x32xf32>
    %71 = vector.shape_cast %70 : vector<1x32x32xf32> to vector<32x32xf32>
    %cst_55 = arith.constant dense<0.000000e+00> : vector<8x32xf32>
    %72 = tpu.matmul %56, %71, %cst_55 {dimension_numbers = #tpu.dot_dimension_numbers<[1], [0], [0], [1], [0, 0, 1, 1], [], []>} : vector<8x32xf32>, vector<32x32xf32>, vector<8x32xf32> -> vector<8x32xf32>
    %73 = arith.addf %69, %72 : vector<8x32xf32>
    %74 = arith.negf %73 : vector<8x32xf32>
    %75 = math.exp %74 : vector<8x32xf32>
    %cst_56 = arith.constant 1.000000e+00 : f32
    %76 = vector.broadcast %cst_56 : f32 to vector<8x32xf32>
    %77 = arith.addf %76, %75 : vector<8x32xf32>
    %78 = arith.divf %76, %77 : vector<8x32xf32>
    %c2_57 = arith.constant 2 : index
    %c8_58 = arith.constant 8 : index
    %c0_59 = arith.constant 0 : index
    %79 = vector.load %arg6[%c2_57, %c8_58, %c0_59] : memref<4x64x32xf32, #tpu.memory_space<vmem>>, vector<1x8x32xf32>
    %80 = vector.shape_cast %79 : vector<1x8x32xf32> to vector<8x32xf32>
    %c2_60 = arith.constant 2 : index
    %c0_61 = arith.constant 0 : index
    %c0_62 = arith.constant 0 : index
    %81 = vector.load %arg3[%c2_60, %c0_61, %c0_62] : memref<4x32x32xf32, #tpu.memory_space<vmem>>, vector<1x32x32xf32>
    %82 = vector.shape_cast %81 : vector<1x32x32xf32> to vector<32x32xf32>
    %cst_63 = arith.constant dense<0.000000e+00> : vector<8x32xf32>
    %83 = tpu.matmul %56, %82, %cst_63 {dimension_numbers = #tpu.dot_dimension_numbers<[1], [0], [0], [1], [0, 0, 1, 1], [], []>} : vector<8x32xf32>, vector<32x32xf32>, vector<8x32xf32> -> vector<8x32xf32>
    %84 = arith.addf %80, %83 : vector<8x32xf32>
    %85 = math.tanh %84 : vector<8x32xf32>
    %c3_64 = arith.constant 3 : index
    %c8_65 = arith.constant 8 : index
    %c0_66 = arith.constant 0 : index
    %86 = vector.load %arg6[%c3_64, %c8_65, %c0_66] : memref<4x64x32xf32, #tpu.memory_space<vmem>>, vector<1x8x32xf32>
    %87 = vector.shape_cast %86 : vector<1x8x32xf32> to vector<8x32xf32>
    %c3_67 = arith.constant 3 : index
    %c0_68 = arith.constant 0 : index
    %c0_69 = arith.constant 0 : index
    %88 = vector.load %arg3[%c3_67, %c0_68, %c0_69] : memref<4x32x32xf32, #tpu.memory_space<vmem>>, vector<1x32x32xf32>
    %89 = vector.shape_cast %88 : vector<1x32x32xf32> to vector<32x32xf32>
    %cst_70 = arith.constant dense<0.000000e+00> : vector<8x32xf32>
    %90 = tpu.matmul %56, %89, %cst_70 {dimension_numbers = #tpu.dot_dimension_numbers<[1], [0], [0], [1], [0, 0, 1, 1], [], []>} : vector<8x32xf32>, vector<32x32xf32>, vector<8x32xf32> -> vector<8x32xf32>
    %91 = arith.addf %87, %90 : vector<8x32xf32>
    %92 = arith.negf %91 : vector<8x32xf32>
    %93 = math.exp %92 : vector<8x32xf32>
    %cst_71 = arith.constant 1.000000e+00 : f32
    %94 = vector.broadcast %cst_71 : f32 to vector<8x32xf32>
    %95 = arith.addf %94, %93 : vector<8x32xf32>
    %96 = arith.divf %94, %95 : vector<8x32xf32>
    %97 = arith.mulf %78, %54 : vector<8x32xf32>
    %98 = arith.mulf %67, %85 : vector<8x32xf32>
    %99 = arith.addf %97, %98 : vector<8x32xf32>
    %100 = math.tanh %99 : vector<8x32xf32>
    %101 = arith.mulf %96, %100 : vector<8x32xf32>
    %c0_72 = arith.constant 0 : index
    %c16_73 = arith.constant 16 : index
    %c0_74 = arith.constant 0 : index
    %102 = vector.load %arg6[%c0_72, %c16_73, %c0_74] : memref<4x64x32xf32, #tpu.memory_space<vmem>>, vector<1x8x32xf32>
    %103 = vector.shape_cast %102 : vector<1x8x32xf32> to vector<8x32xf32>
    %c0_75 = arith.constant 0 : index
    %c0_76 = arith.constant 0 : index
    %c0_77 = arith.constant 0 : index
    %104 = vector.load %arg3[%c0_75, %c0_76, %c0_77] : memref<4x32x32xf32, #tpu.memory_space<vmem>>, vector<1x32x32xf32>
    %105 = vector.shape_cast %104 : vector<1x32x32xf32> to vector<32x32xf32>
    %cst_78 = arith.constant dense<0.000000e+00> : vector<8x32xf32>
    %106 = tpu.matmul %101, %105, %cst_78 {dimension_numbers = #tpu.dot_dimension_numbers<[1], [0], [0], [1], [0, 0, 1, 1], [], []>} : vector<8x32xf32>, vector<32x32xf32>, vector<8x32xf32> -> vector<8x32xf32>
    %107 = arith.addf %103, %106 : vector<8x32xf32>
    %108 = arith.negf %107 : vector<8x32xf32>
    %109 = math.exp %108 : vector<8x32xf32>
    %cst_79 = arith.constant 1.000000e+00 : f32
    %110 = vector.broadcast %cst_79 : f32 to vector<8x32xf32>
    %111 = arith.addf %110, %109 : vector<8x32xf32>
    %112 = arith.divf %110, %111 : vector<8x32xf32>
    %c1_80 = arith.constant 1 : index
    %c16_81 = arith.constant 16 : index
    %c0_82 = arith.constant 0 : index
    %113 = vector.load %arg6[%c1_80, %c16_81, %c0_82] : memref<4x64x32xf32, #tpu.memory_space<vmem>>, vector<1x8x32xf32>
    %114 = vector.shape_cast %113 : vector<1x8x32xf32> to vector<8x32xf32>
    %c1_83 = arith.constant 1 : index
    %c0_84 = arith.constant 0 : index
    %c0_85 = arith.constant 0 : index
    %115 = vector.load %arg3[%c1_83, %c0_84, %c0_85] : memref<4x32x32xf32, #tpu.memory_space<vmem>>, vector<1x32x32xf32>
    %116 = vector.shape_cast %115 : vector<1x32x32xf32> to vector<32x32xf32>
    %cst_86 = arith.constant dense<0.000000e+00> : vector<8x32xf32>
    %117 = tpu.matmul %101, %116, %cst_86 {dimension_numbers = #tpu.dot_dimension_numbers<[1], [0], [0], [1], [0, 0, 1, 1], [], []>} : vector<8x32xf32>, vector<32x32xf32>, vector<8x32xf32> -> vector<8x32xf32>
    %118 = arith.addf %114, %117 : vector<8x32xf32>
    %119 = arith.negf %118 : vector<8x32xf32>
    %120 = math.exp %119 : vector<8x32xf32>
    %cst_87 = arith.constant 1.000000e+00 : f32
    %121 = vector.broadcast %cst_87 : f32 to vector<8x32xf32>
    %122 = arith.addf %121, %120 : vector<8x32xf32>
    %123 = arith.divf %121, %122 : vector<8x32xf32>
    %c2_88 = arith.constant 2 : index
    %c16_89 = arith.constant 16 : index
    %c0_90 = arith.constant 0 : index
    %124 = vector.load %arg6[%c2_88, %c16_89, %c0_90] : memref<4x64x32xf32, #tpu.memory_space<vmem>>, vector<1x8x32xf32>
    %125 = vector.shape_cast %124 : vector<1x8x32xf32> to vector<8x32xf32>
    %c2_91 = arith.constant 2 : index
    %c0_92 = arith.constant 0 : index
    %c0_93 = arith.constant 0 : index
    %126 = vector.load %arg3[%c2_91, %c0_92, %c0_93] : memref<4x32x32xf32, #tpu.memory_space<vmem>>, vector<1x32x32xf32>
    %127 = vector.shape_cast %126 : vector<1x32x32xf32> to vector<32x32xf32>
    %cst_94 = arith.constant dense<0.000000e+00> : vector<8x32xf32>
    %128 = tpu.matmul %101, %127, %cst_94 {dimension_numbers = #tpu.dot_dimension_numbers<[1], [0], [0], [1], [0, 0, 1, 1], [], []>} : vector<8x32xf32>, vector<32x32xf32>, vector<8x32xf32> -> vector<8x32xf32>
    %129 = arith.addf %125, %128 : vector<8x32xf32>
    %130 = math.tanh %129 : vector<8x32xf32>
    %c3_95 = arith.constant 3 : index
    %c16_96 = arith.constant 16 : index
    %c0_97 = arith.constant 0 : index
    %131 = vector.load %arg6[%c3_95, %c16_96, %c0_97] : memref<4x64x32xf32, #tpu.memory_space<vmem>>, vector<1x8x32xf32>
    %132 = vector.shape_cast %131 : vector<1x8x32xf32> to vector<8x32xf32>
    %c3_98 = arith.constant 3 : index
    %c0_99 = arith.constant 0 : index
    %c0_100 = arith.constant 0 : index
    %133 = vector.load %arg3[%c3_98, %c0_99, %c0_100] : memref<4x32x32xf32, #tpu.memory_space<vmem>>, vector<1x32x32xf32>
    %134 = vector.shape_cast %133 : vector<1x32x32xf32> to vector<32x32xf32>
    %cst_101 = arith.constant dense<0.000000e+00> : vector<8x32xf32>
    %135 = tpu.matmul %101, %134, %cst_101 {dimension_numbers = #tpu.dot_dimension_numbers<[1], [0], [0], [1], [0, 0, 1, 1], [], []>} : vector<8x32xf32>, vector<32x32xf32>, vector<8x32xf32> -> vector<8x32xf32>
    %136 = arith.addf %132, %135 : vector<8x32xf32>
    %137 = arith.negf %136 : vector<8x32xf32>
    %138 = math.exp %137 : vector<8x32xf32>
    %cst_102 = arith.constant 1.000000e+00 : f32
    %139 = vector.broadcast %cst_102 : f32 to vector<8x32xf32>
    %140 = arith.addf %139, %138 : vector<8x32xf32>
    %141 = arith.divf %139, %140 : vector<8x32xf32>
    %142 = arith.mulf %123, %99 : vector<8x32xf32>
    %143 = arith.mulf %112, %130 : vector<8x32xf32>
    %144 = arith.addf %142, %143 : vector<8x32xf32>
    %145 = math.tanh %144 : vector<8x32xf32>
    %146 = arith.mulf %141, %145 : vector<8x32xf32>
    %c0_103 = arith.constant 0 : index
    %c24_104 = arith.constant 24 : index
    %c0_105 = arith.constant 0 : index
    %147 = vector.load %arg6[%c0_103, %c24_104, %c0_105] : memref<4x64x32xf32, #tpu.memory_space<vmem>>, vector<1x8x32xf32>
    %148 = vector.shape_cast %147 : vector<1x8x32xf32> to vector<8x32xf32>
    %c0_106 = arith.constant 0 : index
    %c0_107 = arith.constant 0 : index
    %c0_108 = arith.constant 0 : index
    %149 = vector.load %arg3[%c0_106, %c0_107, %c0_108] : memref<4x32x32xf32, #tpu.memory_space<vmem>>, vector<1x32x32xf32>
    %150 = vector.shape_cast %149 : vector<1x32x32xf32> to vector<32x32xf32>
    %cst_109 = arith.constant dense<0.000000e+00> : vector<8x32xf32>
    %151 = tpu.matmul %146, %150, %cst_109 {dimension_numbers = #tpu.dot_dimension_numbers<[1], [0], [0], [1], [0, 0, 1, 1], [], []>} : vector<8x32xf32>, vector<32x32xf32>, vector<8x32xf32> -> vector<8x32xf32>
    %152 = arith.addf %148, %151 : vector<8x32xf32>
    %153 = arith.negf %152 : vector<8x32xf32>
    %154 = math.exp %153 : vector<8x32xf32>
    %cst_110 = arith.constant 1.000000e+00 : f32
    %155 = vector.broadcast %cst_110 : f32 to vector<8x32xf32>
    %156 = arith.addf %155, %154 : vector<8x32xf32>
    %157 = arith.divf %155, %156 : vector<8x32xf32>
    %c1_111 = arith.constant 1 : index
    %c24_112 = arith.constant 24 : index
    %c0_113 = arith.constant 0 : index
    %158 = vector.load %arg6[%c1_111, %c24_112, %c0_113] : memref<4x64x32xf32, #tpu.memory_space<vmem>>, vector<1x8x32xf32>
    %159 = vector.shape_cast %158 : vector<1x8x32xf32> to vector<8x32xf32>
    %c1_114 = arith.constant 1 : index
    %c0_115 = arith.constant 0 : index
    %c0_116 = arith.constant 0 : index
    %160 = vector.load %arg3[%c1_114, %c0_115, %c0_116] : memref<4x32x32xf32, #tpu.memory_space<vmem>>, vector<1x32x32xf32>
    %161 = vector.shape_cast %160 : vector<1x32x32xf32> to vector<32x32xf32>
    %cst_117 = arith.constant dense<0.000000e+00> : vector<8x32xf32>
    %162 = tpu.matmul %146, %161, %cst_117 {dimension_numbers = #tpu.dot_dimension_numbers<[1], [0], [0], [1], [0, 0, 1, 1], [], []>} : vector<8x32xf32>, vector<32x32xf32>, vector<8x32xf32> -> vector<8x32xf32>
    %163 = arith.addf %159, %162 : vector<8x32xf32>
    %164 = arith.negf %163 : vector<8x32xf32>
    %165 = math.exp %164 : vector<8x32xf32>
    %cst_118 = arith.constant 1.000000e+00 : f32
    %166 = vector.broadcast %cst_118 : f32 to vector<8x32xf32>
    %167 = arith.addf %166, %165 : vector<8x32xf32>
    %168 = arith.divf %166, %167 : vector<8x32xf32>
    %c2_119 = arith.constant 2 : index
    %c24_120 = arith.constant 24 : index
    %c0_121 = arith.constant 0 : index
    %169 = vector.load %arg6[%c2_119, %c24_120, %c0_121] : memref<4x64x32xf32, #tpu.memory_space<vmem>>, vector<1x8x32xf32>
    %170 = vector.shape_cast %169 : vector<1x8x32xf32> to vector<8x32xf32>
    %c2_122 = arith.constant 2 : index
    %c0_123 = arith.constant 0 : index
    %c0_124 = arith.constant 0 : index
    %171 = vector.load %arg3[%c2_122, %c0_123, %c0_124] : memref<4x32x32xf32, #tpu.memory_space<vmem>>, vector<1x32x32xf32>
    %172 = vector.shape_cast %171 : vector<1x32x32xf32> to vector<32x32xf32>
    %cst_125 = arith.constant dense<0.000000e+00> : vector<8x32xf32>
    %173 = tpu.matmul %146, %172, %cst_125 {dimension_numbers = #tpu.dot_dimension_numbers<[1], [0], [0], [1], [0, 0, 1, 1], [], []>} : vector<8x32xf32>, vector<32x32xf32>, vector<8x32xf32> -> vector<8x32xf32>
    %174 = arith.addf %170, %173 : vector<8x32xf32>
    %175 = math.tanh %174 : vector<8x32xf32>
    %c3_126 = arith.constant 3 : index
    %c24_127 = arith.constant 24 : index
    %c0_128 = arith.constant 0 : index
    %176 = vector.load %arg6[%c3_126, %c24_127, %c0_128] : memref<4x64x32xf32, #tpu.memory_space<vmem>>, vector<1x8x32xf32>
    %177 = vector.shape_cast %176 : vector<1x8x32xf32> to vector<8x32xf32>
    %c3_129 = arith.constant 3 : index
    %c0_130 = arith.constant 0 : index
    %c0_131 = arith.constant 0 : index
    %178 = vector.load %arg3[%c3_129, %c0_130, %c0_131] : memref<4x32x32xf32, #tpu.memory_space<vmem>>, vector<1x32x32xf32>
    %179 = vector.shape_cast %178 : vector<1x32x32xf32> to vector<32x32xf32>
    %cst_132 = arith.constant dense<0.000000e+00> : vector<8x32xf32>
    %180 = tpu.matmul %146, %179, %cst_132 {dimension_numbers = #tpu.dot_dimension_numbers<[1], [0], [0], [1], [0, 0, 1, 1], [], []>} : vector<8x32xf32>, vector<32x32xf32>, vector<8x32xf32> -> vector<8x32xf32>
    %181 = arith.addf %177, %180 : vector<8x32xf32>
    %182 = arith.negf %181 : vector<8x32xf32>
    %183 = math.exp %182 : vector<8x32xf32>
    %cst_133 = arith.constant 1.000000e+00 : f32
    %184 = vector.broadcast %cst_133 : f32 to vector<8x32xf32>
    %185 = arith.addf %184, %183 : vector<8x32xf32>
    %186 = arith.divf %184, %185 : vector<8x32xf32>
    %187 = arith.mulf %168, %144 : vector<8x32xf32>
    %188 = arith.mulf %157, %175 : vector<8x32xf32>
    %189 = arith.addf %187, %188 : vector<8x32xf32>
    %190 = math.tanh %189 : vector<8x32xf32>
    %191 = arith.mulf %186, %190 : vector<8x32xf32>
    %c0_134 = arith.constant 0 : index
    %c32 = arith.constant 32 : index
    %c0_135 = arith.constant 0 : index
    %192 = vector.load %arg6[%c0_134, %c32, %c0_135] : memref<4x64x32xf32, #tpu.memory_space<vmem>>, vector<1x8x32xf32>
    %193 = vector.shape_cast %192 : vector<1x8x32xf32> to vector<8x32xf32>
    %c0_136 = arith.constant 0 : index
    %c0_137 = arith.constant 0 : index
    %c0_138 = arith.constant 0 : index
    %194 = vector.load %arg3[%c0_136, %c0_137, %c0_138] : memref<4x32x32xf32, #tpu.memory_space<vmem>>, vector<1x32x32xf32>
    %195 = vector.shape_cast %194 : vector<1x32x32xf32> to vector<32x32xf32>
    %cst_139 = arith.constant dense<0.000000e+00> : vector<8x32xf32>
    %196 = tpu.matmul %191, %195, %cst_139 {dimension_numbers = #tpu.dot_dimension_numbers<[1], [0], [0], [1], [0, 0, 1, 1], [], []>} : vector<8x32xf32>, vector<32x32xf32>, vector<8x32xf32> -> vector<8x32xf32>
    %197 = arith.addf %193, %196 : vector<8x32xf32>
    %198 = arith.negf %197 : vector<8x32xf32>
    %199 = math.exp %198 : vector<8x32xf32>
    %cst_140 = arith.constant 1.000000e+00 : f32
    %200 = vector.broadcast %cst_140 : f32 to vector<8x32xf32>
    %201 = arith.addf %200, %199 : vector<8x32xf32>
    %202 = arith.divf %200, %201 : vector<8x32xf32>
    %c1_141 = arith.constant 1 : index
    %c32_142 = arith.constant 32 : index
    %c0_143 = arith.constant 0 : index
    %203 = vector.load %arg6[%c1_141, %c32_142, %c0_143] : memref<4x64x32xf32, #tpu.memory_space<vmem>>, vector<1x8x32xf32>
    %204 = vector.shape_cast %203 : vector<1x8x32xf32> to vector<8x32xf32>
    %c1_144 = arith.constant 1 : index
    %c0_145 = arith.constant 0 : index
    %c0_146 = arith.constant 0 : index
    %205 = vector.load %arg3[%c1_144, %c0_145, %c0_146] : memref<4x32x32xf32, #tpu.memory_space<vmem>>, vector<1x32x32xf32>
    %206 = vector.shape_cast %205 : vector<1x32x32xf32> to vector<32x32xf32>
    %cst_147 = arith.constant dense<0.000000e+00> : vector<8x32xf32>
    %207 = tpu.matmul %191, %206, %cst_147 {dimension_numbers = #tpu.dot_dimension_numbers<[1], [0], [0], [1], [0, 0, 1, 1], [], []>} : vector<8x32xf32>, vector<32x32xf32>, vector<8x32xf32> -> vector<8x32xf32>
    %208 = arith.addf %204, %207 : vector<8x32xf32>
    %209 = arith.negf %208 : vector<8x32xf32>
    %210 = math.exp %209 : vector<8x32xf32>
    %cst_148 = arith.constant 1.000000e+00 : f32
    %211 = vector.broadcast %cst_148 : f32 to vector<8x32xf32>
    %212 = arith.addf %211, %210 : vector<8x32xf32>
    %213 = arith.divf %211, %212 : vector<8x32xf32>
    %c2_149 = arith.constant 2 : index
    %c32_150 = arith.constant 32 : index
    %c0_151 = arith.constant 0 : index
    %214 = vector.load %arg6[%c2_149, %c32_150, %c0_151] : memref<4x64x32xf32, #tpu.memory_space<vmem>>, vector<1x8x32xf32>
    %215 = vector.shape_cast %214 : vector<1x8x32xf32> to vector<8x32xf32>
    %c2_152 = arith.constant 2 : index
    %c0_153 = arith.constant 0 : index
    %c0_154 = arith.constant 0 : index
    %216 = vector.load %arg3[%c2_152, %c0_153, %c0_154] : memref<4x32x32xf32, #tpu.memory_space<vmem>>, vector<1x32x32xf32>
    %217 = vector.shape_cast %216 : vector<1x32x32xf32> to vector<32x32xf32>
    %cst_155 = arith.constant dense<0.000000e+00> : vector<8x32xf32>
    %218 = tpu.matmul %191, %217, %cst_155 {dimension_numbers = #tpu.dot_dimension_numbers<[1], [0], [0], [1], [0, 0, 1, 1], [], []>} : vector<8x32xf32>, vector<32x32xf32>, vector<8x32xf32> -> vector<8x32xf32>
    %219 = arith.addf %215, %218 : vector<8x32xf32>
    %220 = math.tanh %219 : vector<8x32xf32>
    %c3_156 = arith.constant 3 : index
    %c32_157 = arith.constant 32 : index
    %c0_158 = arith.constant 0 : index
    %221 = vector.load %arg6[%c3_156, %c32_157, %c0_158] : memref<4x64x32xf32, #tpu.memory_space<vmem>>, vector<1x8x32xf32>
    %222 = vector.shape_cast %221 : vector<1x8x32xf32> to vector<8x32xf32>
    %c3_159 = arith.constant 3 : index
    %c0_160 = arith.constant 0 : index
    %c0_161 = arith.constant 0 : index
    %223 = vector.load %arg3[%c3_159, %c0_160, %c0_161] : memref<4x32x32xf32, #tpu.memory_space<vmem>>, vector<1x32x32xf32>
    %224 = vector.shape_cast %223 : vector<1x32x32xf32> to vector<32x32xf32>
    %cst_162 = arith.constant dense<0.000000e+00> : vector<8x32xf32>
    %225 = tpu.matmul %191, %224, %cst_162 {dimension_numbers = #tpu.dot_dimension_numbers<[1], [0], [0], [1], [0, 0, 1, 1], [], []>} : vector<8x32xf32>, vector<32x32xf32>, vector<8x32xf32> -> vector<8x32xf32>
    %226 = arith.addf %222, %225 : vector<8x32xf32>
    %227 = arith.negf %226 : vector<8x32xf32>
    %228 = math.exp %227 : vector<8x32xf32>
    %cst_163 = arith.constant 1.000000e+00 : f32
    %229 = vector.broadcast %cst_163 : f32 to vector<8x32xf32>
    %230 = arith.addf %229, %228 : vector<8x32xf32>
    %231 = arith.divf %229, %230 : vector<8x32xf32>
    %232 = arith.mulf %213, %189 : vector<8x32xf32>
    %233 = arith.mulf %202, %220 : vector<8x32xf32>
    %234 = arith.addf %232, %233 : vector<8x32xf32>
    %235 = math.tanh %234 : vector<8x32xf32>
    %236 = arith.mulf %231, %235 : vector<8x32xf32>
    %c0_164 = arith.constant 0 : index
    %c40 = arith.constant 40 : index
    %c0_165 = arith.constant 0 : index
    %237 = vector.load %arg6[%c0_164, %c40, %c0_165] : memref<4x64x32xf32, #tpu.memory_space<vmem>>, vector<1x8x32xf32>
    %238 = vector.shape_cast %237 : vector<1x8x32xf32> to vector<8x32xf32>
    %c0_166 = arith.constant 0 : index
    %c0_167 = arith.constant 0 : index
    %c0_168 = arith.constant 0 : index
    %239 = vector.load %arg3[%c0_166, %c0_167, %c0_168] : memref<4x32x32xf32, #tpu.memory_space<vmem>>, vector<1x32x32xf32>
    %240 = vector.shape_cast %239 : vector<1x32x32xf32> to vector<32x32xf32>
    %cst_169 = arith.constant dense<0.000000e+00> : vector<8x32xf32>
    %241 = tpu.matmul %236, %240, %cst_169 {dimension_numbers = #tpu.dot_dimension_numbers<[1], [0], [0], [1], [0, 0, 1, 1], [], []>} : vector<8x32xf32>, vector<32x32xf32>, vector<8x32xf32> -> vector<8x32xf32>
    %242 = arith.addf %238, %241 : vector<8x32xf32>
    %243 = arith.negf %242 : vector<8x32xf32>
    %244 = math.exp %243 : vector<8x32xf32>
    %cst_170 = arith.constant 1.000000e+00 : f32
    %245 = vector.broadcast %cst_170 : f32 to vector<8x32xf32>
    %246 = arith.addf %245, %244 : vector<8x32xf32>
    %247 = arith.divf %245, %246 : vector<8x32xf32>
    %c1_171 = arith.constant 1 : index
    %c40_172 = arith.constant 40 : index
    %c0_173 = arith.constant 0 : index
    %248 = vector.load %arg6[%c1_171, %c40_172, %c0_173] : memref<4x64x32xf32, #tpu.memory_space<vmem>>, vector<1x8x32xf32>
    %249 = vector.shape_cast %248 : vector<1x8x32xf32> to vector<8x32xf32>
    %c1_174 = arith.constant 1 : index
    %c0_175 = arith.constant 0 : index
    %c0_176 = arith.constant 0 : index
    %250 = vector.load %arg3[%c1_174, %c0_175, %c0_176] : memref<4x32x32xf32, #tpu.memory_space<vmem>>, vector<1x32x32xf32>
    %251 = vector.shape_cast %250 : vector<1x32x32xf32> to vector<32x32xf32>
    %cst_177 = arith.constant dense<0.000000e+00> : vector<8x32xf32>
    %252 = tpu.matmul %236, %251, %cst_177 {dimension_numbers = #tpu.dot_dimension_numbers<[1], [0], [0], [1], [0, 0, 1, 1], [], []>} : vector<8x32xf32>, vector<32x32xf32>, vector<8x32xf32> -> vector<8x32xf32>
    %253 = arith.addf %249, %252 : vector<8x32xf32>
    %254 = arith.negf %253 : vector<8x32xf32>
    %255 = math.exp %254 : vector<8x32xf32>
    %cst_178 = arith.constant 1.000000e+00 : f32
    %256 = vector.broadcast %cst_178 : f32 to vector<8x32xf32>
    %257 = arith.addf %256, %255 : vector<8x32xf32>
    %258 = arith.divf %256, %257 : vector<8x32xf32>
    %c2_179 = arith.constant 2 : index
    %c40_180 = arith.constant 40 : index
    %c0_181 = arith.constant 0 : index
    %259 = vector.load %arg6[%c2_179, %c40_180, %c0_181] : memref<4x64x32xf32, #tpu.memory_space<vmem>>, vector<1x8x32xf32>
    %260 = vector.shape_cast %259 : vector<1x8x32xf32> to vector<8x32xf32>
    %c2_182 = arith.constant 2 : index
    %c0_183 = arith.constant 0 : index
    %c0_184 = arith.constant 0 : index
    %261 = vector.load %arg3[%c2_182, %c0_183, %c0_184] : memref<4x32x32xf32, #tpu.memory_space<vmem>>, vector<1x32x32xf32>
    %262 = vector.shape_cast %261 : vector<1x32x32xf32> to vector<32x32xf32>
    %cst_185 = arith.constant dense<0.000000e+00> : vector<8x32xf32>
    %263 = tpu.matmul %236, %262, %cst_185 {dimension_numbers = #tpu.dot_dimension_numbers<[1], [0], [0], [1], [0, 0, 1, 1], [], []>} : vector<8x32xf32>, vector<32x32xf32>, vector<8x32xf32> -> vector<8x32xf32>
    %264 = arith.addf %260, %263 : vector<8x32xf32>
    %265 = math.tanh %264 : vector<8x32xf32>
    %c3_186 = arith.constant 3 : index
    %c40_187 = arith.constant 40 : index
    %c0_188 = arith.constant 0 : index
    %266 = vector.load %arg6[%c3_186, %c40_187, %c0_188] : memref<4x64x32xf32, #tpu.memory_space<vmem>>, vector<1x8x32xf32>
    %267 = vector.shape_cast %266 : vector<1x8x32xf32> to vector<8x32xf32>
    %c3_189 = arith.constant 3 : index
    %c0_190 = arith.constant 0 : index
    %c0_191 = arith.constant 0 : index
    %268 = vector.load %arg3[%c3_189, %c0_190, %c0_191] : memref<4x32x32xf32, #tpu.memory_space<vmem>>, vector<1x32x32xf32>
    %269 = vector.shape_cast %268 : vector<1x32x32xf32> to vector<32x32xf32>
    %cst_192 = arith.constant dense<0.000000e+00> : vector<8x32xf32>
    %270 = tpu.matmul %236, %269, %cst_192 {dimension_numbers = #tpu.dot_dimension_numbers<[1], [0], [0], [1], [0, 0, 1, 1], [], []>} : vector<8x32xf32>, vector<32x32xf32>, vector<8x32xf32> -> vector<8x32xf32>
    %271 = arith.addf %267, %270 : vector<8x32xf32>
    %272 = arith.negf %271 : vector<8x32xf32>
    %273 = math.exp %272 : vector<8x32xf32>
    %cst_193 = arith.constant 1.000000e+00 : f32
    %274 = vector.broadcast %cst_193 : f32 to vector<8x32xf32>
    %275 = arith.addf %274, %273 : vector<8x32xf32>
    %276 = arith.divf %274, %275 : vector<8x32xf32>
    %277 = arith.mulf %258, %234 : vector<8x32xf32>
    %278 = arith.mulf %247, %265 : vector<8x32xf32>
    %279 = arith.addf %277, %278 : vector<8x32xf32>
    %280 = math.tanh %279 : vector<8x32xf32>
    %281 = arith.mulf %276, %280 : vector<8x32xf32>
    %c0_194 = arith.constant 0 : index
    %c48 = arith.constant 48 : index
    %c0_195 = arith.constant 0 : index
    %282 = vector.load %arg6[%c0_194, %c48, %c0_195] : memref<4x64x32xf32, #tpu.memory_space<vmem>>, vector<1x8x32xf32>
    %283 = vector.shape_cast %282 : vector<1x8x32xf32> to vector<8x32xf32>
    %c0_196 = arith.constant 0 : index
    %c0_197 = arith.constant 0 : index
    %c0_198 = arith.constant 0 : index
    %284 = vector.load %arg3[%c0_196, %c0_197, %c0_198] : memref<4x32x32xf32, #tpu.memory_space<vmem>>, vector<1x32x32xf32>
    %285 = vector.shape_cast %284 : vector<1x32x32xf32> to vector<32x32xf32>
    %cst_199 = arith.constant dense<0.000000e+00> : vector<8x32xf32>
    %286 = tpu.matmul %281, %285, %cst_199 {dimension_numbers = #tpu.dot_dimension_numbers<[1], [0], [0], [1], [0, 0, 1, 1], [], []>} : vector<8x32xf32>, vector<32x32xf32>, vector<8x32xf32> -> vector<8x32xf32>
    %287 = arith.addf %283, %286 : vector<8x32xf32>
    %288 = arith.negf %287 : vector<8x32xf32>
    %289 = math.exp %288 : vector<8x32xf32>
    %cst_200 = arith.constant 1.000000e+00 : f32
    %290 = vector.broadcast %cst_200 : f32 to vector<8x32xf32>
    %291 = arith.addf %290, %289 : vector<8x32xf32>
    %292 = arith.divf %290, %291 : vector<8x32xf32>
    %c1_201 = arith.constant 1 : index
    %c48_202 = arith.constant 48 : index
    %c0_203 = arith.constant 0 : index
    %293 = vector.load %arg6[%c1_201, %c48_202, %c0_203] : memref<4x64x32xf32, #tpu.memory_space<vmem>>, vector<1x8x32xf32>
    %294 = vector.shape_cast %293 : vector<1x8x32xf32> to vector<8x32xf32>
    %c1_204 = arith.constant 1 : index
    %c0_205 = arith.constant 0 : index
    %c0_206 = arith.constant 0 : index
    %295 = vector.load %arg3[%c1_204, %c0_205, %c0_206] : memref<4x32x32xf32, #tpu.memory_space<vmem>>, vector<1x32x32xf32>
    %296 = vector.shape_cast %295 : vector<1x32x32xf32> to vector<32x32xf32>
    %cst_207 = arith.constant dense<0.000000e+00> : vector<8x32xf32>
    %297 = tpu.matmul %281, %296, %cst_207 {dimension_numbers = #tpu.dot_dimension_numbers<[1], [0], [0], [1], [0, 0, 1, 1], [], []>} : vector<8x32xf32>, vector<32x32xf32>, vector<8x32xf32> -> vector<8x32xf32>
    %298 = arith.addf %294, %297 : vector<8x32xf32>
    %299 = arith.negf %298 : vector<8x32xf32>
    %300 = math.exp %299 : vector<8x32xf32>
    %cst_208 = arith.constant 1.000000e+00 : f32
    %301 = vector.broadcast %cst_208 : f32 to vector<8x32xf32>
    %302 = arith.addf %301, %300 : vector<8x32xf32>
    %303 = arith.divf %301, %302 : vector<8x32xf32>
    %c2_209 = arith.constant 2 : index
    %c48_210 = arith.constant 48 : index
    %c0_211 = arith.constant 0 : index
    %304 = vector.load %arg6[%c2_209, %c48_210, %c0_211] : memref<4x64x32xf32, #tpu.memory_space<vmem>>, vector<1x8x32xf32>
    %305 = vector.shape_cast %304 : vector<1x8x32xf32> to vector<8x32xf32>
    %c2_212 = arith.constant 2 : index
    %c0_213 = arith.constant 0 : index
    %c0_214 = arith.constant 0 : index
    %306 = vector.load %arg3[%c2_212, %c0_213, %c0_214] : memref<4x32x32xf32, #tpu.memory_space<vmem>>, vector<1x32x32xf32>
    %307 = vector.shape_cast %306 : vector<1x32x32xf32> to vector<32x32xf32>
    %cst_215 = arith.constant dense<0.000000e+00> : vector<8x32xf32>
    %308 = tpu.matmul %281, %307, %cst_215 {dimension_numbers = #tpu.dot_dimension_numbers<[1], [0], [0], [1], [0, 0, 1, 1], [], []>} : vector<8x32xf32>, vector<32x32xf32>, vector<8x32xf32> -> vector<8x32xf32>
    %309 = arith.addf %305, %308 : vector<8x32xf32>
    %310 = math.tanh %309 : vector<8x32xf32>
    %c3_216 = arith.constant 3 : index
    %c48_217 = arith.constant 48 : index
    %c0_218 = arith.constant 0 : index
    %311 = vector.load %arg6[%c3_216, %c48_217, %c0_218] : memref<4x64x32xf32, #tpu.memory_space<vmem>>, vector<1x8x32xf32>
    %312 = vector.shape_cast %311 : vector<1x8x32xf32> to vector<8x32xf32>
    %c3_219 = arith.constant 3 : index
    %c0_220 = arith.constant 0 : index
    %c0_221 = arith.constant 0 : index
    %313 = vector.load %arg3[%c3_219, %c0_220, %c0_221] : memref<4x32x32xf32, #tpu.memory_space<vmem>>, vector<1x32x32xf32>
    %314 = vector.shape_cast %313 : vector<1x32x32xf32> to vector<32x32xf32>
    %cst_222 = arith.constant dense<0.000000e+00> : vector<8x32xf32>
    %315 = tpu.matmul %281, %314, %cst_222 {dimension_numbers = #tpu.dot_dimension_numbers<[1], [0], [0], [1], [0, 0, 1, 1], [], []>} : vector<8x32xf32>, vector<32x32xf32>, vector<8x32xf32> -> vector<8x32xf32>
    %316 = arith.addf %312, %315 : vector<8x32xf32>
    %317 = arith.negf %316 : vector<8x32xf32>
    %318 = math.exp %317 : vector<8x32xf32>
    %cst_223 = arith.constant 1.000000e+00 : f32
    %319 = vector.broadcast %cst_223 : f32 to vector<8x32xf32>
    %320 = arith.addf %319, %318 : vector<8x32xf32>
    %321 = arith.divf %319, %320 : vector<8x32xf32>
    %322 = arith.mulf %303, %279 : vector<8x32xf32>
    %323 = arith.mulf %292, %310 : vector<8x32xf32>
    %324 = arith.addf %322, %323 : vector<8x32xf32>
    %325 = math.tanh %324 : vector<8x32xf32>
    %326 = arith.mulf %321, %325 : vector<8x32xf32>
    %c0_224 = arith.constant 0 : index
    %c56 = arith.constant 56 : index
    %c0_225 = arith.constant 0 : index
    %327 = vector.load %arg6[%c0_224, %c56, %c0_225] : memref<4x64x32xf32, #tpu.memory_space<vmem>>, vector<1x8x32xf32>
    %328 = vector.shape_cast %327 : vector<1x8x32xf32> to vector<8x32xf32>
    %c0_226 = arith.constant 0 : index
    %c0_227 = arith.constant 0 : index
    %c0_228 = arith.constant 0 : index
    %329 = vector.load %arg3[%c0_226, %c0_227, %c0_228] : memref<4x32x32xf32, #tpu.memory_space<vmem>>, vector<1x32x32xf32>
    %330 = vector.shape_cast %329 : vector<1x32x32xf32> to vector<32x32xf32>
    %cst_229 = arith.constant dense<0.000000e+00> : vector<8x32xf32>
    %331 = tpu.matmul %326, %330, %cst_229 {dimension_numbers = #tpu.dot_dimension_numbers<[1], [0], [0], [1], [0, 0, 1, 1], [], []>} : vector<8x32xf32>, vector<32x32xf32>, vector<8x32xf32> -> vector<8x32xf32>
    %332 = arith.addf %328, %331 : vector<8x32xf32>
    %333 = arith.negf %332 : vector<8x32xf32>
    %334 = math.exp %333 : vector<8x32xf32>
    %cst_230 = arith.constant 1.000000e+00 : f32
    %335 = vector.broadcast %cst_230 : f32 to vector<8x32xf32>
    %336 = arith.addf %335, %334 : vector<8x32xf32>
    %337 = arith.divf %335, %336 : vector<8x32xf32>
    %c1_231 = arith.constant 1 : index
    %c56_232 = arith.constant 56 : index
    %c0_233 = arith.constant 0 : index
    %338 = vector.load %arg6[%c1_231, %c56_232, %c0_233] : memref<4x64x32xf32, #tpu.memory_space<vmem>>, vector<1x8x32xf32>
    %339 = vector.shape_cast %338 : vector<1x8x32xf32> to vector<8x32xf32>
    %c1_234 = arith.constant 1 : index
    %c0_235 = arith.constant 0 : index
    %c0_236 = arith.constant 0 : index
    %340 = vector.load %arg3[%c1_234, %c0_235, %c0_236] : memref<4x32x32xf32, #tpu.memory_space<vmem>>, vector<1x32x32xf32>
    %341 = vector.shape_cast %340 : vector<1x32x32xf32> to vector<32x32xf32>
    %cst_237 = arith.constant dense<0.000000e+00> : vector<8x32xf32>
    %342 = tpu.matmul %326, %341, %cst_237 {dimension_numbers = #tpu.dot_dimension_numbers<[1], [0], [0], [1], [0, 0, 1, 1], [], []>} : vector<8x32xf32>, vector<32x32xf32>, vector<8x32xf32> -> vector<8x32xf32>
    %343 = arith.addf %339, %342 : vector<8x32xf32>
    %344 = arith.negf %343 : vector<8x32xf32>
    %345 = math.exp %344 : vector<8x32xf32>
    %cst_238 = arith.constant 1.000000e+00 : f32
    %346 = vector.broadcast %cst_238 : f32 to vector<8x32xf32>
    %347 = arith.addf %346, %345 : vector<8x32xf32>
    %348 = arith.divf %346, %347 : vector<8x32xf32>
    %c2_239 = arith.constant 2 : index
    %c56_240 = arith.constant 56 : index
    %c0_241 = arith.constant 0 : index
    %349 = vector.load %arg6[%c2_239, %c56_240, %c0_241] : memref<4x64x32xf32, #tpu.memory_space<vmem>>, vector<1x8x32xf32>
    %350 = vector.shape_cast %349 : vector<1x8x32xf32> to vector<8x32xf32>
    %c2_242 = arith.constant 2 : index
    %c0_243 = arith.constant 0 : index
    %c0_244 = arith.constant 0 : index
    %351 = vector.load %arg3[%c2_242, %c0_243, %c0_244] : memref<4x32x32xf32, #tpu.memory_space<vmem>>, vector<1x32x32xf32>
    %352 = vector.shape_cast %351 : vector<1x32x32xf32> to vector<32x32xf32>
    %cst_245 = arith.constant dense<0.000000e+00> : vector<8x32xf32>
    %353 = tpu.matmul %326, %352, %cst_245 {dimension_numbers = #tpu.dot_dimension_numbers<[1], [0], [0], [1], [0, 0, 1, 1], [], []>} : vector<8x32xf32>, vector<32x32xf32>, vector<8x32xf32> -> vector<8x32xf32>
    %354 = arith.addf %350, %353 : vector<8x32xf32>
    %355 = math.tanh %354 : vector<8x32xf32>
    %c3_246 = arith.constant 3 : index
    %c56_247 = arith.constant 56 : index
    %c0_248 = arith.constant 0 : index
    %356 = vector.load %arg6[%c3_246, %c56_247, %c0_248] : memref<4x64x32xf32, #tpu.memory_space<vmem>>, vector<1x8x32xf32>
    %357 = vector.shape_cast %356 : vector<1x8x32xf32> to vector<8x32xf32>
    %c3_249 = arith.constant 3 : index
    %c0_250 = arith.constant 0 : index
    %c0_251 = arith.constant 0 : index
    %358 = vector.load %arg3[%c3_249, %c0_250, %c0_251] : memref<4x32x32xf32, #tpu.memory_space<vmem>>, vector<1x32x32xf32>
    %359 = vector.shape_cast %358 : vector<1x32x32xf32> to vector<32x32xf32>
    %cst_252 = arith.constant dense<0.000000e+00> : vector<8x32xf32>
    %360 = tpu.matmul %326, %359, %cst_252 {dimension_numbers = #tpu.dot_dimension_numbers<[1], [0], [0], [1], [0, 0, 1, 1], [], []>} : vector<8x32xf32>, vector<32x32xf32>, vector<8x32xf32> -> vector<8x32xf32>
    %361 = arith.addf %357, %360 : vector<8x32xf32>
    %362 = arith.negf %361 : vector<8x32xf32>
    %363 = math.exp %362 : vector<8x32xf32>
    %cst_253 = arith.constant 1.000000e+00 : f32
    %364 = vector.broadcast %cst_253 : f32 to vector<8x32xf32>
    %365 = arith.addf %364, %363 : vector<8x32xf32>
    %366 = arith.divf %364, %365 : vector<8x32xf32>
    %367 = arith.mulf %348, %324 : vector<8x32xf32>
    %368 = arith.mulf %337, %355 : vector<8x32xf32>
    %369 = arith.addf %367, %368 : vector<8x32xf32>
    %370 = math.tanh %369 : vector<8x32xf32>
    %371 = arith.mulf %366, %370 : vector<8x32xf32>
    %c32_254 = arith.constant 32 : index
    %c0_255 = arith.constant 0 : index
    %372 = vector.load %arg4[%c32_254, %c0_255] : memref<88x32xf32, #tpu.memory_space<vmem>>, vector<32x16xf32>
    %c64 = arith.constant 64 : index
    %c0_256 = arith.constant 0 : index
    %373 = vector.load %arg4[%c64, %c0_256] : memref<88x32xf32, #tpu.memory_space<vmem>>, vector<1x16xf32>
    %c72 = arith.constant 72 : index
    %c0_257 = arith.constant 0 : index
    %374 = vector.load %arg4[%c72, %c0_257] : memref<88x32xf32, #tpu.memory_space<vmem>>, vector<1x16xf32>
    %c80 = arith.constant 80 : index
    %c0_258 = arith.constant 0 : index
    %375 = vector.load %arg4[%c80, %c0_258] : memref<88x32xf32, #tpu.memory_space<vmem>>, vector<1x1xf32>
    %cst_259 = arith.constant dense<0.000000e+00> : vector<8x16xf32>
    %376 = tpu.matmul %371, %372, %cst_259 {dimension_numbers = #tpu.dot_dimension_numbers<[1], [0], [0], [1], [0, 0, 1, 1], [], []>} : vector<8x32xf32>, vector<32x16xf32>, vector<8x16xf32> -> vector<8x16xf32>
    %377 = vector.broadcast %373 : vector<1x16xf32> to vector<8x16xf32>
    %378 = arith.addf %376, %377 : vector<8x16xf32>
    %379 = math.tanh %378 : vector<8x16xf32>
    %cst_260 = arith.constant dense<0.000000e+00> : vector<1x8xf32>
    %380 = tpu.matmul %374, %379, %cst_260 {dimension_numbers = #tpu.dot_dimension_numbers<[1], [1], [0], [0], [0, 0, 1, 0], [], []>} : vector<1x16xf32>, vector<8x16xf32>, vector<1x8xf32> -> vector<1x8xf32>
    %381 = vector.broadcast %375 : vector<1x1xf32> to vector<1x8xf32>
    %382 = arith.addf %380, %381 : vector<1x8xf32>
    %c0_261 = arith.constant 0 : index
    %c0_262 = arith.constant 0 : index
    %383 = vector.load %arg5[%c0_261, %c0_262] : memref<1x8xf32, #tpu.memory_space<vmem>>, vector<1x8xf32>
    tpu.vector_store %arg5[%c0_261, %c0_262], %382 {strides = array<i32>} : memref<1x8xf32, #tpu.memory_space<vmem>>, vector<1x8xf32>,
    return
  }
  func.func @transform_0(%arg0: i32) -> (i32, i32) {
    %c0_i32 = arith.constant 0 : i32
    %c0_i32_0 = arith.constant 0 : i32
    %c0_i32_1 = arith.constant 0 : i32
    return %c0_i32, %c0_i32_0 : i32, i32
  }
  func.func @transform_1(%arg0: i32) -> (i32, i32, i32) {
    %c0_i32 = arith.constant 0 : i32
    %c0_i32_0 = arith.constant 0 : i32
    %c0_i32_1 = arith.constant 0 : i32
    %c0_i32_2 = arith.constant 0 : i32
    return %c0_i32, %c0_i32_0, %c0_i32_1 : i32, i32, i32
  }
  func.func @transform_2(%arg0: i32) -> (i32, i32, i32) {
    %c0_i32 = arith.constant 0 : i32
    %c0_i32_0 = arith.constant 0 : i32
    %c0_i32_1 = arith.constant 0 : i32
    %c0_i32_2 = arith.constant 0 : i32
    return %c0_i32, %c0_i32_0, %c0_i32_1 : i32, i32, i32
  }
  func.func @transform_3(%arg0: i32) -> (i32, i32) {
    %c0_i32 = arith.constant 0 : i32
    %c0_i32_0 = arith.constant 0 : i32
    %c0_i32_1 = arith.constant 0 : i32
    return %c0_i32, %c0_i32_0 : i32, i32
  }
  func.func @transform_4(%arg0: i32) -> (i32, i32) {
    %c0_i32 = arith.constant 0 : i32
    %c0_i32_0 = arith.constant 0 : i32
    %c0_i32_1 = arith.constant 0 : i32
    return %c0_i32, %c0_i32_0 : i32, i32
  }
}

</mosaic_0001>

<bundles_post_ra>
// kernel: tpu_custom_call.1
= control target key start
LH: loop header
LB: loop body
LE: loop exit
PB: predicated region body
PF: predicated region fallthrough
CT: control target
= control target key end

     0   :  { %vm33_vm0 = vcmask 130048   ;;  %s4477_s0 = inlined_call_operand.vmem [shape: f32[64,16], index: 0, kind: input, shape index: {}]   ;;  %s4478_s1 = inlined_call_operand.vmem [shape: f32[4,16,32], index: 1, kind: input, shape index: {}]   ;;  %s4479_s2 = inlined_call_operand.vmem [shape: f32[4,32,32], index: 2, kind: input, shape index: {}]   ;;  %s4480_s3 = inlined_call_operand.vmem [shape: f32[88,32], index: 3, kind: input, shape index: {}]   ;;  %s4481_s4 = inlined_call_operand.hbm [shape: f32[1,8], index: 4, kind: output, shape index: {}]  }
   0x1   :  { %v27_v0 = vld [vmem:[%s4478_s1] sm:$0xff]  ;;  %v28_v1 = vld [vmem:[%s4478_s1 + $0x8] sm:$0xff]  ;;  %v2972_v2 = vld [vmem:[%s4478_s1 + $0x10] sm:$0xff] }
   0x2   :  { %v3647_v3 = vpack.c.bf16 %v28_v1, %v27_v0  ;;  %v2973_v4 = vld [vmem:[%s4478_s1 + $0x18] sm:$0xff]  ;;  %v18_v5 = vld [vmem:[%s4477_s0] sm:$0xff]  ;;  %v2994_v7 = vld [vmem:[%s4478_s1 + $0x30] sm:$0xff] }
   0x3   :  { %v3651_v6 = vpack.c.bf16 %v2973_v4, %v2972_v2  ;;  %3263 = vmatprep.mubr.msk.f32.mxu0 %vm33_vm0, %v18_v5  ;;  %3279 = vmatprep.mubr.msk.f32.mxu1 %vm33_vm0, %v18_v5  ;;  %v2995_v8 = vld [vmem:[%s4478_s1 + $0x38] sm:$0xff]  ;;  %v2983_v9 = vld [vmem:[%s4478_s1 + $0x20] sm:$0xff]  ;;  %v2984_v11 = vld [vmem:[%s4478_s1 + $0x28] sm:$0xff] }
   0x4   :  { %3648 = vmatprep.subr.bf16.mxu0 %v3647_v3  ;;  %v3659_v10 = vpack.c.bf16 %v2995_v8, %v2994_v7  ;;  %v19_v12 = vld [vmem:[%s4477_s0 + $0x8] sm:$0xff]  ;;  %v3655_v13 = vpack.c.bf16 %v2984_v11, %v2983_v9  ;;  %v20_v14 = vld [vmem:[%s4477_s0 + $0x10] sm:$0xff] }
   0x5   :  { %3652 = vmatprep.subr.bf16.mxu1 %v3651_v6  ;;  %3650 = vmatpush3.bf16.msra.mxu0 %v3647_v3 }
   0x6   :  { %3654 = vmatpush3.bf16.msra.mxu1 %v3651_v6 }
   0x7   :  { %9 = vsyncpa [#allocation4], 0  ;;  %3660 = vmatprep.subr.bf16.mxu1 %v3659_v10  ;;  %3656 = vmatprep.subr.bf16.mxu0 %v3655_v13  ;;  %v21_v15 = vld [vmem:[%s4477_s0 + $0x18] sm:$0xff]  ;;  %v22_v16 = vld [vmem:[%s4477_s0 + $0x20] sm:$0xff]  ;;  %v3993_v23 = vmov 0.0|0.0   ;;  %vm3994_vm1 = vmmov 0  }
   0x8   :  { %3264 = vmatmul.mubr.msk.f32.vlgmr.msra.gmra.mrb[0].mxu0 %vm33_vm0, %v19_v12  ;;  %v23_v17 = vld [vmem:[%s4477_s0 + $0x28] sm:$0xff]  ;;  %v24_v18 = vld [vmem:[%s4477_s0 + $0x30] sm:$0xff]  ;;  %v25_v19 = vld [vmem:[%s4477_s0 + $0x38] sm:$0xff]  ;;  %v3995_v31 = vmov 0.0   ;;  %vm163_vm2 = vcmask 261120   ;;  %s3997_s17 = smov [#allocation3]  }
   0x9   :  { %3280 = vmatmul.mubr.msk.f32.vlgmr.msra.gmra.mrb[0].mxu1 %vm33_vm0, %v19_v12  ;;  %3266 = vmatprep.mubr.msk.f32.mxu0 %vm33_vm0, %v20_v14  ;;  %v558_v20 = vld [vmem:[%s4479_s2] sm:$0xff]  ;;  %v559_v21 = vld [vmem:[%s4479_s2 + $0x8] sm:$0xff]  ;;  %v560_v26 = vld [vmem:[%s4479_s2 + $0x10] sm:$0xff]  ;;  %s2955_s18 = sshll.u32 %s3997_s17, 4  ;;  %vm2947_vm3 = vcmask 57344   ;;  %s2956_s18 = int_to_ptr.vmem [resolvable:$true] %s2955_s18 }
   0xa   :  { %3662 = vmatpush3.bf16.msra.mxu1 %v3659_v10  ;;  %3282 = vmatprep.mubr.msk.f32.mxu1 %vm33_vm0, %v20_v14  ;;  %v3009_v22 = vld [vmem:[%s4479_s2 + $0x20] sm:$0xff]  ;;  %v4114_v24 = vpack.c.bf16 %v559_v21, %v558_v20  ;;  %v3010_v25 = vld [vmem:[%s4479_s2 + $0x28] sm:$0xff]  ;;  %v561_v27 = vld [vmem:[%s4479_s2 + $0x18] sm:$0xff]  ;;  %s3969_s19 = scalar_lea.vmem %s2956_s18, 16  ;;  %s3973_s0 = scalar_lea.vmem %s2956_s18, 32 }
   0xb   :  { %3658 = vmatpush3.bf16.msra.mxu0 %v3655_v13  ;;  %3669 = vmatprep.subr.bf16.mxu1 %v3993_v23  ;;  %v4125_v28 = vpack.c.bf16 %v3010_v25, %v3009_v22  ;;  %v3011_v29 = vld [vmem:[%s4479_s2 + $0x30] sm:$0xff]  ;;  %v3012_v30 = vld [vmem:[%s4479_s2 + $0x38] sm:$0xff]  ;;  %v4138_v32 = vpack.c.bf16 %v561_v27, %v560_v26  ;;  %v2963_v34 = vld [vmem:[%s4480_s3] ss:$0 sm:$0xff]  ;;  %p3970_p0 = scmp.ne.s32.totalorder %s2956_s18, %s3969_s19  ;;  %p3974_p1 = scmp.lt.s32.totalorder %s2956_s18, %s2956_s18 }
   0xc   :  { %3267 = vmatmul.mubr.msk.f32.gmra.mrb[2].mxu0 %vm33_vm0, %v21_v15  ;;  %3663 = vmatprep.subr.bf16.mxu0 %v3993_v23  ;;  %v4142_v33 = vpack.c.bf16 %v3012_v30, %v3011_v29  ;;  %v2974_v35 = vld [vmem:[%s4480_s3 + $0x8] ss:$0 sm:$0xff]  ;;  %v2985_v4 = vld [vmem:[%s4480_s3 + $0x10] ss:$0 sm:$0xff]  ;;  %v2996_v6 = vld [vmem:[%s4480_s3 + $0x18] ss:$0 sm:$0xff]  ;;  %p3975_p2 = scmp.lt.s32.totalorder %s3973_s0, %s3969_s19 }
   0xd   :  { %3283 = vmatmul.mubr.msk.f32.gmra.mrb[2].mxu1 %vm33_vm0, %v21_v15  ;;  %3269 = vmatprep.mubr.msk.f32.mxu0 %vm33_vm0, %v22_v16 }
   0xe   :  { %3285 = vmatprep.mubr.msk.f32.mxu1 %vm33_vm0, %v22_v16  ;;  %p3976_p3 = por %p3975_p2, %p3974_p1 }
  0x10   :  { %3270 = vmatmul.mubr.msk.f32.gmra.mrb[4].mxu0 %vm33_vm0, %v23_v17  ;;  %p3977_p4 = pnand %p3976_p3, %p3970_p0 }
  0x11   :  { %3286 = vmatmul.mubr.msk.f32.gmra.mrb[4].mxu1 %vm33_vm0, %v23_v17  ;;  %3272 = vmatprep.mubr.msk.f32.mxu0 %vm33_vm0, %v24_v18 }
  0x12   :  { %3288 = vmatprep.mubr.msk.f32.mxu1 %vm33_vm0, %v24_v18 }
  0x14   :  { %3273 = vmatmul.mubr.msk.f32.gmra.mrb[6].mxu0 %vm33_vm0, %v25_v19 }
  0x15   :  { %3289 = vmatmul.mubr.msk.f32.gmra.mrb[6].mxu1 %vm33_vm0, %v25_v19  ;;  %3295 = vmatprep.mubr.msk.f32.mxu0 %vm33_vm0, %v18_v5 }
  0x16   :  { %3311 = vmatprep.mubr.msk.f32.mxu1 %vm33_vm0, %v18_v5 }
  0x18   :  { %3296 = vmatmul.mubr.msk.f32.vlgmr.msra.gmra.mrb[8].mxu0 %vm33_vm0, %v19_v12 }
  0x19   :  { %3312 = vmatmul.mubr.msk.f32.vlgmr.msra.gmra.mrb[8].mxu1 %vm33_vm0, %v19_v12  ;;  %3298 = vmatprep.mubr.msk.f32.mxu0 %vm33_vm0, %v20_v14 }
  0x1a   :  { %3314 = vmatprep.mubr.msk.f32.mxu1 %vm33_vm0, %v20_v14  ;;  %3665 = vmatpush3.bf16.msra.mxu0 %v4114_v24 }
  0x1b   :  { %3671 = vmatpush3.bf16.msra.mxu1 %v4125_v28  ;;  %3666 = vmatprep.subr.bf16.mxu0 %v3993_v23 }
  0x1c   :  { %3299 = vmatmul.mubr.msk.f32.gmra.mrb[10].mxu0 %vm33_vm0, %v21_v15  ;;  %3672 = vmatprep.subr.bf16.mxu1 %v3993_v23 }
  0x1d   :  { %3315 = vmatmul.mubr.msk.f32.gmra.mrb[10].mxu1 %vm33_vm0, %v21_v15  ;;  %3301 = vmatprep.mubr.msk.f32.mxu0 %vm33_vm0, %v22_v16 }
  0x1e   :  { %3317 = vmatprep.mubr.msk.f32.mxu1 %vm33_vm0, %v22_v16  ;;  %3668 = vmatpush3.bf16.msra.mxu0 %v4138_v32 }
  0x1f   :  { %3674 = vmatpush3.bf16.msra.mxu1 %v4142_v33  ;;  %3675 = vmatprep.subr.bf16.mxu0 %v3993_v23 }
  0x20   :  { %3302 = vmatmul.mubr.msk.f32.gmra.mrb[12].mxu0 %vm33_vm0, %v23_v17  ;;  %3681 = vmatprep.subr.bf16.mxu1 %v3993_v23 }
  0x21   :  { %3318 = vmatmul.mubr.msk.f32.gmra.mrb[12].mxu1 %vm33_vm0, %v23_v17  ;;  %3304 = vmatprep.mubr.msk.f32.mxu0 %vm33_vm0, %v24_v18 }
  0x22   :  { %3320 = vmatprep.mubr.msk.f32.mxu1 %vm33_vm0, %v24_v18 }
  0x24   :  { %3305 = vmatmul.mubr.msk.f32.gmra.mrb[14].mxu0 %vm33_vm0, %v25_v19 }
  0x25   :  { %3321 = vmatmul.mubr.msk.f32.gmra.mrb[14].mxu1 %vm33_vm0, %v25_v19  ;;  %3331 = vmatprep.mubr.msk.f32.mxu0 %vm3994_vm1, %v3995_v31 }
  0x26   :  { %3342 = vmatprep.mubr.msk.f32.mxu1 %vm3994_vm1, %v3995_v31 }
  0xdb   :  { %v3265_v36 = vpop.f32.mrb[0].mxu0 }
  0xdc   :  { %v3281_v37 = vpop.f32.mrb[0].mxu1  ;;  %v130_v38 = vadd.f32 %v3265_v36, %v2963_v34  ;;  %v124_v39 = vpop.f32.mrb[1].mxu0 }
  0xdd   :  { %v252_v40 = vadd.f32 %v3281_v37, %v2974_v35  ;;  %v246_v41 = vpop.f32.mrb[1].mxu1  ;;  %v125_v42 = vadd.f32 %v2963_v34, %v124_v39 }
  0xde   :  { %165 = vst.msk [vmem:[#allocation2 + $0x8] sm:$0xff] %vm163_vm2, %v130_v38 }
  0xdf   :  { %287 = vst.msk [vmem:[#allocation2 + $0x48] sm:$0xff] %vm163_vm2, %v252_v40  ;;  %164 = vst.msk [vmem:[#allocation2] sm:$0xff] %vm163_vm2, %v125_v42  ;;  %v3268_v43 = vpop.f32.mrb[2].mxu0 }
  0xe0   :  { %v3284_v44 = vpop.f32.mrb[2].mxu1  ;;  %v140_v45 = vadd.f32 %v3268_v43, %v2963_v34  ;;  %v134_v46 = vpop.f32.mrb[3].mxu0 }
  0xe1   :  { %v262_v47 = vadd.f32 %v3284_v44, %v2974_v35  ;;  %v256_v48 = vpop.f32.mrb[3].mxu1  ;;  %v135_v49 = vadd.f32 %v2963_v34, %v134_v46 }
  0xe2   :  { %167 = vst.msk [vmem:[#allocation2 + $0x18] sm:$0xff] %vm163_vm2, %v140_v45  ;;  %v257_v50 = vadd.f32 %v2974_v35, %v256_v48 }
  0xe3   :  { %289 = vst.msk [vmem:[#allocation2 + $0x58] sm:$0xff] %vm163_vm2, %v262_v47  ;;  %166 = vst.msk [vmem:[#allocation2 + $0x10] sm:$0xff] %vm163_vm2, %v135_v49  ;;  %v3271_v51 = vpop.f32.mrb[4].mxu0 }
  0xe4   :  { %288 = vst.msk [vmem:[#allocation2 + $0x50] sm:$0xff] %vm163_vm2, %v257_v50  ;;  %v3287_v52 = vpop.f32.mrb[4].mxu1  ;;  %v150_v53 = vadd.f32 %v3271_v51, %v2963_v34  ;;  %v144_v54 = vpop.f32.mrb[5].mxu0 }
  0xe5   :  { %v272_v55 = vadd.f32 %v3287_v52, %v2974_v35  ;;  %v266_v56 = vpop.f32.mrb[5].mxu1  ;;  %v145_v57 = vadd.f32 %v2963_v34, %v144_v54 }
  0xe6   :  { %v538_v58 = vld [vmem:[#allocation2] sm:$0xff]  ;;  %169 = vst.msk [vmem:[#allocation2 + $0x28] sm:$0xff] %vm163_vm2, %v150_v53  ;;  %v267_v59 = vadd.f32 %v2974_v35, %v266_v56  ;;  %v3016_v56 = vld [vmem:[%s4479_s2 + $0x48] sm:$0xff] }
  0xe7   :  { %v3005_v60 = vmul.f32 -1.442695, %v538_v58  ;;  %291 = vst.msk [vmem:[#allocation2 + $0x68] sm:$0xff] %vm163_vm2, %v272_v55  ;;  %168 = vst.msk [vmem:[#allocation2 + $0x20] sm:$0xff] %vm163_vm2, %v145_v57  ;;  %v3274_v61 = vpop.f32.mrb[6].mxu0  ;;  %v3015_v55 = vld [vmem:[%s4479_s2 + $0x40] sm:$0xff] }
  0xe8   :  { %290 = vst.msk [vmem:[#allocation2 + $0x60] sm:$0xff] %vm163_vm2, %v267_v59  ;;  %v3290_v62 = vpop.f32.mrb[6].mxu1  ;;  %v160_v63 = vadd.f32 %v3274_v61, %v2963_v34  ;;  %v154_v0 = vpop.f32.mrb[7].mxu0  ;;  %v3020_v57 = vld [vmem:[%s4479_s2 + $0x60] sm:$0xff]  ;;  %v3021_v58 = vld [vmem:[%s4479_s2 + $0x68] sm:$0xff]  ;;  %v4207_v61 = vpack.c.bf16 %v3016_v56, %v3015_v55 }
  0xe9   :  { %3843 = vpow2.f32 %v3005_v60  ;;  %v282_v1 = vadd.f32 %v3290_v62, %v2974_v35  ;;  %v276_v2 = vpop.f32.mrb[7].mxu1  ;;  %v155_v3 = vadd.f32 %v2963_v34, %v154_v0  ;;  %v4209_v62 = vpack.c.bf16 %v3021_v58, %v3020_v57 }
  0xea   :  { %171 = vst.msk [vmem:[#allocation2 + $0x38] sm:$0xff] %vm163_vm2, %v160_v63  ;;  %v277_v5 = vadd.f32 %v2974_v35, %v276_v2  ;;  %v3017_v63 = vld [vmem:[%s4479_s2 + $0x50] sm:$0xff] }
  0xeb   :  { %293 = vst.msk [vmem:[#allocation2 + $0x78] sm:$0xff] %vm163_vm2, %v282_v1  ;;  %170 = vst.msk [vmem:[#allocation2 + $0x30] sm:$0xff] %vm163_vm2, %v155_v3  ;;  %v3297_v7 = vpop.f32.mrb[8].mxu0  ;;  %v3018_v1 = vld [vmem:[%s4479_s2 + $0x58] sm:$0xff]  ;;  %v3022_v2 = vld [vmem:[%s4479_s2 + $0x70] sm:$0xff] }
  0xec   :  { %292 = vst.msk [vmem:[#allocation2 + $0x70] sm:$0xff] %vm163_vm2, %v277_v5  ;;  %v374_v8 = vadd.f32 %v3297_v7, %v2985_v4  ;;  %v3313_v9 = vpop.f32.mrb[8].mxu1  ;;  %v368_v10 = vpop.f32.mrb[9].mxu0  ;;  %v3023_v3 = vld [vmem:[%s4479_s2 + $0x78] sm:$0xff] }
  0xed   :  { %v496_v11 = vadd.f32 %v3313_v9, %v2996_v6  ;;  %v369_v12 = vadd.f32 %v2985_v4, %v368_v10  ;;  %v490_v13 = vpop.f32.mrb[9].mxu1  ;;  %v4229_v5 = vpack.c.bf16 %v3023_v3, %v3022_v2 }
  0xee   :  { %409 = vst.msk [vmem:[#allocation2 + $0x88] sm:$0xff] %vm163_vm2, %v374_v8  ;;  %v491_v14 = vadd.f32 %v2996_v6, %v490_v13  ;;  %v642_v8 = vld [vmem:[#allocation2 + $0x48] sm:$0xff] }
  0xef   :  { %531 = vst.msk [vmem:[#allocation2 + $0xc8] sm:$0xff] %vm163_vm2, %v496_v11  ;;  %408 = vst.msk [vmem:[#allocation2 + $0x80] sm:$0xff] %vm163_vm2, %v369_v12  ;;  %v3300_v15 = vpop.f32.mrb[10].mxu0 }
  0xf0   :  { %530 = vst.msk [vmem:[#allocation2 + $0xc0] sm:$0xff] %vm163_vm2, %v491_v14  ;;  %v384_v16 = vadd.f32 %v3300_v15, %v2985_v4  ;;  %v3316_v17 = vpop.f32.mrb[10].mxu1  ;;  %v378_v18 = vpop.f32.mrb[11].mxu0 }
  0xf1   :  { %v506_v19 = vadd.f32 %v3316_v17, %v2996_v6  ;;  %v379_v20 = vadd.f32 %v2985_v4, %v378_v18  ;;  %v500_v21 = vpop.f32.mrb[11].mxu1 }
  0xf2   :  { %411 = vst.msk [vmem:[#allocation2 + $0x98] sm:$0xff] %vm163_vm2, %v384_v16  ;;  %v501_v22 = vadd.f32 %v2996_v6, %v500_v21 }
  0xf3   :  { %v3844_v25 = vpop.eup %3843  ;;  %533 = vst.msk [vmem:[#allocation2 + $0xd8] sm:$0xff] %vm163_vm2, %v506_v19  ;;  %410 = vst.msk [vmem:[#allocation2 + $0x90] sm:$0xff] %vm163_vm2, %v379_v20  ;;  %v3303_v26 = vpop.f32.mrb[12].mxu0 }
  0xf4   :  { %v542_v27 = vadd.f32 1.0, %v3844_v25  ;;  %532 = vst.msk [vmem:[#allocation2 + $0xd0] sm:$0xff] %vm163_vm2, %v501_v22  ;;  %v394_v29 = vadd.f32 %v3303_v26, %v2985_v4  ;;  %v3319_v30 = vpop.f32.mrb[12].mxu1  ;;  %v388_v34 = vpop.f32.mrb[13].mxu0 }
  0xf5   :  { %v516_v35 = vadd.f32 %v3319_v30, %v2996_v6  ;;  %v389_v36 = vadd.f32 %v2985_v4, %v388_v34  ;;  %v510_v37 = vpop.f32.mrb[13].mxu1  ;;  %v725_v22 = vld [vmem:[#allocation2 + $0x88] sm:$0xff] }
  0xf6   :  { %3845 = vrcp.f32 %v542_v27  ;;  %v545_v38 = vld [vmem:[#allocation2 + $0x80] sm:$0xff]  ;;  %413 = vst.msk [vmem:[#allocation2 + $0xa8] sm:$0xff] %vm163_vm2, %v394_v29  ;;  %v511_v39 = vadd.f32 %v2996_v6, %v510_v37  ;;  %v803_v17 = vld [vmem:[#allocation2 + $0xc8] sm:$0xff] }
  0xf7   :  { %3847 = vtanh.f32 %v545_v38  ;;  %v547_v40 = vld [vmem:[#allocation2 + $0xc0] sm:$0xff]  ;;  %535 = vst.msk [vmem:[#allocation2 + $0xe8] sm:$0xff] %vm163_vm2, %v516_v35  ;;  %412 = vst.msk [vmem:[#allocation2 + $0xa0] sm:$0xff] %vm163_vm2, %v389_v36  ;;  %v3306_v41 = vpop.f32.mrb[14].mxu0 }
  0xf8   :  { %v3006_v42 = vmul.f32 -1.442695, %v547_v40  ;;  %534 = vst.msk [vmem:[#allocation2 + $0xe0] sm:$0xff] %vm163_vm2, %v511_v39  ;;  %v404_v43 = vadd.f32 %v3306_v41, %v2985_v4  ;;  %v3322_v44 = vpop.f32.mrb[14].mxu1  ;;  %v398_v45 = vpop.f32.mrb[15].mxu0 }
  0xf9   :  { %v526_v46 = vadd.f32 %v3322_v44, %v2996_v6  ;;  %v399_v47 = vadd.f32 %v2985_v4, %v398_v45  ;;  %v520_v48 = vpop.f32.mrb[15].mxu1  ;;  %v4227_v4 = vpack.c.bf16 %v3018_v1, %v3017_v63 }
  0xfa   :  { %3849 = vpow2.f32 %v3006_v42  ;;  %415 = vst.msk [vmem:[#allocation2 + $0xb8] sm:$0xff] %vm163_vm2, %v404_v43  ;;  %v521_v49 = vadd.f32 %v2996_v6, %v520_v48  ;;  %v557_v6 = vld [vmem:[#allocation2 + $0x8] sm:$0xff]  ;;  %v972_v48 = vld [vmem:[#allocation2 + $0x50] sm:$0xff] }
  0xfb   :  { %537 = vst.msk [vmem:[#allocation2 + $0xf8] sm:$0xff] %vm163_vm2, %v526_v46  ;;  %414 = vst.msk [vmem:[#allocation2 + $0xb0] sm:$0xff] %vm163_vm2, %v399_v47  ;;  %v891_v46 = vld [vmem:[#allocation2 + $0x10] sm:$0xff] }
  0xfc   :  { %536 = vst.msk [vmem:[#allocation2 + $0xf0] sm:$0xff] %vm163_vm2, %v521_v49  ;;  %v1123_v57 = vld [vmem:[#allocation2 + $0xd0] sm:$0xff] }
 0x100   :  { %v3846_v50 = vpop.eup %3845 }
 0x101   :  { %v3848_v51 = vpop.eup %3847 }
 0x102   :  { %v4192_v52 = vmul.f32 %v3848_v51, %v3846_v50 }
 0x104   :  { %v3850_v53 = vpop.eup %3849  ;;  %3851 = vtanh.f32 %v4192_v52 }
 0x105   :  { %v551_v54 = vadd.f32 1.0, %v3850_v53 }
 0x107   :  { %3853 = vrcp.f32 %v551_v54 }
 0x10e   :  { %v3852_v59 = vpop.eup %3851 }
 0x111   :  { %v3854_v60 = vpop.eup %3853 }
 0x112   :  { %v556_v0 = vmul.f32 %v3854_v60, %v3852_v59 }
 0x114   :  { %3332 = vmatmul.mubr.msk.f32.vlgmr.msra.gmra.mrb[16].mxu0 %vm163_vm2, %v556_v0  ;;  %3343 = vmatmul.mubr.msk.f32.vlgmr.msra.gmra.mrb[16].mxu1 %vm163_vm2, %v556_v0 }
 0x115   :  { %3677 = vmatpush3.bf16.msra.mxu0 %v4207_v61  ;;  %3683 = vmatpush3.bf16.msra.mxu1 %v4209_v62 }
 0x116   :  { %3678 = vmatprep.subr.bf16.mxu0 %v3993_v23  ;;  %3684 = vmatprep.subr.bf16.mxu1 %v3993_v23 }
 0x117   :  { %3353 = vmatprep.mubr.msk.f32.mxu0 %vm3994_vm1, %v3995_v31  ;;  %3364 = vmatprep.mubr.msk.f32.mxu1 %vm3994_vm1, %v3995_v31 }
 0x119   :  { %3680 = vmatpush3.bf16.msra.mxu0 %v4227_v4  ;;  %3686 = vmatpush3.bf16.msra.mxu1 %v4229_v5 }
 0x11a   :  { %3687 = vmatprep.subr.bf16.mxu0 %v3993_v23  ;;  %3693 = vmatprep.subr.bf16.mxu1 %v3993_v23 }
 0x11c   :  { %3354 = vmatmul.mubr.msk.f32.vlgmr.msra.gmra.mrb[18].mxu0 %vm163_vm2, %v556_v0  ;;  %3365 = vmatmul.mubr.msk.f32.vlgmr.msra.gmra.mrb[18].mxu1 %vm163_vm2, %v556_v0  ;;  %v1050_v0 = vld [vmem:[#allocation2 + $0x90] sm:$0xff] }
 0x11d   :  { %3689 = vmatpush3.bf16.msra.mxu0 %v4114_v24  ;;  %3695 = vmatpush3.bf16.msra.mxu1 %v4125_v28 }
 0x11e   :  { %3690 = vmatprep.subr.bf16.mxu0 %v3993_v23  ;;  %3696 = vmatprep.subr.bf16.mxu1 %v3993_v23 }
 0x11f   :  { %3375 = vmatprep.mubr.msk.f32.mxu0 %vm3994_vm1, %v3995_v31  ;;  %3386 = vmatprep.mubr.msk.f32.mxu1 %vm3994_vm1, %v3995_v31 }
 0x121   :  { %3692 = vmatpush3.bf16.msra.mxu0 %v4138_v32  ;;  %3698 = vmatpush3.bf16.msra.mxu1 %v4142_v33 }
 0x122   :  { %3699 = vmatprep.subr.bf16.mxu0 %v3993_v23  ;;  %3705 = vmatprep.subr.bf16.mxu1 %v3993_v23 }
 0x1e7   :  { %v631_v7 = vpop.f32.mrb[16].mxu0  ;;  %v714_v9 = vpop.f32.mrb[16].mxu1 }
 0x1e8   :  { %v635_v10 = vadd.f32 %v631_v7, %v557_v6  ;;  %v718_v11 = vadd.f32 %v714_v9, %v642_v8  ;;  %v3333_v12 = vpop.f32.mrb[17].mxu0  ;;  %v3344_v13 = vpop.f32.mrb[17].mxu1 }
 0x1ea   :  { %v3008_v14 = vmul.f32 -1.442695, %v635_v10  ;;  %v3014_v15 = vmul.f32 -1.442695, %v718_v11 }
 0x1ec   :  { %3855 = vpow2.f32 %v3008_v14 }
 0x1ed   :  { %3857 = vpow2.f32 %v3014_v15 }
 0x1ef   :  { %v797_v16 = vpop.f32.mrb[18].mxu0  ;;  %v875_v18 = vpop.f32.mrb[18].mxu1 }
 0x1f0   :  { %v879_v19 = vadd.f32 %v875_v18, %v803_v17  ;;  %v3355_v20 = vpop.f32.mrb[19].mxu0  ;;  %v3366_v21 = vpop.f32.mrb[19].mxu1  ;;  %v801_v26 = vadd.f32 %v797_v16, %v725_v22  ;;  %v1287_v22 = vld [vmem:[#allocation2 + $0x58] sm:$0xff] }
 0x1f1   :  { %v1206_v20 = vld [vmem:[#allocation2 + $0x18] sm:$0xff] }
 0x1f2   :  { %v3025_v25 = vmul.f32 -1.442695, %v879_v19 }
 0x1f4   :  { %3859 = vpow2.f32 %v3025_v25 }
 0x1f5   :  { %3861 = vtanh.f32 %v801_v26 }
 0x1f6   :  { %v3856_v27 = vpop.eup %3855 }
 0x1f7   :  { %v3858_v29 = vpop.eup %3857  ;;  %v639_v30 = vadd.f32 1.0, %v3856_v27 }
 0x1f8   :  { %v722_v34 = vadd.f32 1.0, %v3858_v29 }
 0x1f9   :  { %3863 = vrcp.f32 %v639_v30 }
 0x1fa   :  { %3865 = vrcp.f32 %v722_v34 }
 0x1fe   :  { %v3860_v35 = vpop.eup %3859 }
 0x1ff   :  { %v3862_v36 = vpop.eup %3861  ;;  %v883_v40 = vadd.f32 1.0, %v3860_v35 }
 0x201   :  { %3867 = vrcp.f32 %v883_v40 }
 0x203   :  { %v3864_v37 = vpop.eup %3863 }
 0x204   :  { %v3866_v38 = vpop.eup %3865  ;;  %v887_v39 = vmul.f32 %v3864_v37, %v3862_v36  ;;  %v1438_v37 = vld [vmem:[#allocation2 + $0xd8] sm:$0xff] }
 0x205   :  { %v886_v41 = vmul.f32 %v3866_v38, %v4192_v52 }
 0x207   :  { %v4256_v42 = vadd.f32 %v887_v39, %v886_v41 }
 0x209   :  { %3869 = vtanh.f32 %v4256_v42 }
 0x20b   :  { %v3868_v43 = vpop.eup %3867 }
 0x213   :  { %v3870_v44 = vpop.eup %3869 }
 0x214   :  { %v890_v45 = vmul.f32 %v3870_v44, %v3868_v43 }
 0x216   :  { %3376 = vmatmul.mubr.msk.f32.vlgmr.msra.gmra.mrb[20].mxu0 %vm163_vm2, %v890_v45  ;;  %3387 = vmatmul.mubr.msk.f32.vlgmr.msra.gmra.mrb[20].mxu1 %vm163_vm2, %v890_v45 }
 0x217   :  { %3701 = vmatpush3.bf16.msra.mxu0 %v4207_v61  ;;  %3707 = vmatpush3.bf16.msra.mxu1 %v4209_v62 }
 0x218   :  { %3702 = vmatprep.subr.bf16.mxu0 %v3993_v23  ;;  %3708 = vmatprep.subr.bf16.mxu1 %v3993_v23 }
 0x219   :  { %3397 = vmatprep.mubr.msk.f32.mxu0 %vm3994_vm1, %v3995_v31  ;;  %3408 = vmatprep.mubr.msk.f32.mxu1 %vm3994_vm1, %v3995_v31 }
 0x21b   :  { %3704 = vmatpush3.bf16.msra.mxu0 %v4227_v4  ;;  %3710 = vmatpush3.bf16.msra.mxu1 %v4229_v5 }
 0x21c   :  { %3711 = vmatprep.subr.bf16.mxu0 %v3993_v23  ;;  %3717 = vmatprep.subr.bf16.mxu1 %v3993_v23 }
 0x21e   :  { %3398 = vmatmul.mubr.msk.f32.vlgmr.msra.gmra.mrb[22].mxu0 %vm163_vm2, %v890_v45  ;;  %3409 = vmatmul.mubr.msk.f32.vlgmr.msra.gmra.mrb[22].mxu1 %vm163_vm2, %v890_v45 }
 0x21f   :  { %3713 = vmatpush3.bf16.msra.mxu0 %v4114_v24  ;;  %3719 = vmatpush3.bf16.msra.mxu1 %v4125_v28 }
 0x220   :  { %3714 = vmatprep.subr.bf16.mxu0 %v3993_v23  ;;  %3720 = vmatprep.subr.bf16.mxu1 %v3993_v23 }
 0x221   :  { %3419 = vmatprep.mubr.msk.f32.mxu0 %vm3994_vm1, %v3995_v31  ;;  %3430 = vmatprep.mubr.msk.f32.mxu1 %vm3994_vm1, %v3995_v31 }
 0x223   :  { %3716 = vmatpush3.bf16.msra.mxu0 %v4138_v32  ;;  %3722 = vmatpush3.bf16.msra.mxu1 %v4142_v33 }
 0x224   :  { %3723 = vmatprep.subr.bf16.mxu0 %v3993_v23  ;;  %3729 = vmatprep.subr.bf16.mxu1 %v3993_v23 }
 0x2e9   :  { %v961_v47 = vpop.f32.mrb[20].mxu0  ;;  %v1039_v49 = vpop.f32.mrb[20].mxu1 }
 0x2ea   :  { %v965_v50 = vadd.f32 %v961_v47, %v891_v46  ;;  %v1043_v51 = vadd.f32 %v1039_v49, %v972_v48  ;;  %v3377_v52 = vpop.f32.mrb[21].mxu0  ;;  %v3388_v53 = vpop.f32.mrb[21].mxu1 }
 0x2ec   :  { %v3027_v54 = vmul.f32 -1.442695, %v965_v50  ;;  %v3029_v55 = vmul.f32 -1.442695, %v1043_v51 }
 0x2ee   :  { %3871 = vpow2.f32 %v3027_v54 }
 0x2ef   :  { %3873 = vpow2.f32 %v3029_v55 }
 0x2f1   :  { %v1117_v56 = vpop.f32.mrb[22].mxu0  ;;  %v1190_v58 = vpop.f32.mrb[22].mxu1 }
 0x2f2   :  { %v1194_v59 = vadd.f32 %v1190_v58, %v1123_v57  ;;  %v3399_v60 = vpop.f32.mrb[23].mxu0  ;;  %v3410_v63 = vpop.f32.mrb[23].mxu1  ;;  %v1121_v2 = vadd.f32 %v1117_v56, %v1050_v0  ;;  %v1602_v0 = vld [vmem:[#allocation2 + $0x60] sm:$0xff] }
 0x2f3   :  { %v1521_v60 = vld [vmem:[#allocation2 + $0x20] sm:$0xff] }
 0x2f4   :  { %v3032_v1 = vmul.f32 -1.442695, %v1194_v59 }
 0x2f6   :  { %3875 = vpow2.f32 %v3032_v1 }
 0x2f7   :  { %3877 = vtanh.f32 %v1121_v2 }
 0x2f8   :  { %v3872_v3 = vpop.eup %3871 }
 0x2f9   :  { %v3874_v6 = vpop.eup %3873  ;;  %v969_v7 = vadd.f32 1.0, %v3872_v3 }
 0x2fa   :  { %v1047_v8 = vadd.f32 1.0, %v3874_v6 }
 0x2fb   :  { %3879 = vrcp.f32 %v969_v7 }
 0x2fc   :  { %3881 = vrcp.f32 %v1047_v8 }
 0x300   :  { %v3876_v9 = vpop.eup %3875 }
 0x301   :  { %v3878_v10 = vpop.eup %3877  ;;  %v1198_v14 = vadd.f32 1.0, %v3876_v9 }
 0x303   :  { %3883 = vrcp.f32 %v1198_v14 }
 0x305   :  { %v3880_v11 = vpop.eup %3879 }
 0x306   :  { %v3882_v12 = vpop.eup %3881  ;;  %v1202_v13 = vmul.f32 %v3880_v11, %v3878_v10  ;;  %v1753_v11 = vld [vmem:[#allocation2 + $0xe0] sm:$0xff] }
 0x307   :  { %v1201_v15 = vmul.f32 %v3882_v12, %v4256_v42  ;;  %v1365_v42 = vld [vmem:[#allocation2 + $0x98] sm:$0xff] }
 0x309   :  { %v4288_v16 = vadd.f32 %v1202_v13, %v1201_v15 }
 0x30b   :  { %3885 = vtanh.f32 %v4288_v16 }
 0x30d   :  { %v3884_v17 = vpop.eup %3883 }
 0x315   :  { %v3886_v18 = vpop.eup %3885 }
 0x316   :  { %v1205_v19 = vmul.f32 %v3886_v18, %v3884_v17 }
 0x318   :  { %3420 = vmatmul.mubr.msk.f32.vlgmr.msra.gmra.mrb[24].mxu0 %vm163_vm2, %v1205_v19  ;;  %3431 = vmatmul.mubr.msk.f32.vlgmr.msra.gmra.mrb[24].mxu1 %vm163_vm2, %v1205_v19 }
 0x319   :  { %3725 = vmatpush3.bf16.msra.mxu0 %v4207_v61  ;;  %3731 = vmatpush3.bf16.msra.mxu1 %v4209_v62 }
 0x31a   :  { %3726 = vmatprep.subr.bf16.mxu0 %v3993_v23  ;;  %3732 = vmatprep.subr.bf16.mxu1 %v3993_v23 }
 0x31b   :  { %3441 = vmatprep.mubr.msk.f32.mxu0 %vm3994_vm1, %v3995_v31  ;;  %3452 = vmatprep.mubr.msk.f32.mxu1 %vm3994_vm1, %v3995_v31 }
 0x31d   :  { %3728 = vmatpush3.bf16.msra.mxu0 %v4227_v4  ;;  %3734 = vmatpush3.bf16.msra.mxu1 %v4229_v5 }
 0x31e   :  { %3735 = vmatprep.subr.bf16.mxu0 %v3993_v23  ;;  %3741 = vmatprep.subr.bf16.mxu1 %v3993_v23 }
 0x320   :  { %3442 = vmatmul.mubr.msk.f32.vlgmr.msra.gmra.mrb[26].mxu0 %vm163_vm2, %v1205_v19  ;;  %3453 = vmatmul.mubr.msk.f32.vlgmr.msra.gmra.mrb[26].mxu1 %vm163_vm2, %v1205_v19 }
 0x321   :  { %3737 = vmatpush3.bf16.msra.mxu0 %v4114_v24  ;;  %3743 = vmatpush3.bf16.msra.mxu1 %v4125_v28 }
 0x322   :  { %3738 = vmatprep.subr.bf16.mxu0 %v3993_v23  ;;  %3744 = vmatprep.subr.bf16.mxu1 %v3993_v23 }
 0x323   :  { %3463 = vmatprep.mubr.msk.f32.mxu0 %vm3994_vm1, %v3995_v31  ;;  %3474 = vmatprep.mubr.msk.f32.mxu1 %vm3994_vm1, %v3995_v31 }
 0x325   :  { %3740 = vmatpush3.bf16.msra.mxu0 %v4138_v32  ;;  %3746 = vmatpush3.bf16.msra.mxu1 %v4142_v33 }
 0x326   :  { %3747 = vmatprep.subr.bf16.mxu0 %v3993_v23  ;;  %3753 = vmatprep.subr.bf16.mxu1 %v3993_v23 }
 0x3eb   :  { %v1276_v21 = vpop.f32.mrb[24].mxu0  ;;  %v1354_v25 = vpop.f32.mrb[24].mxu1 }
 0x3ec   :  { %v1280_v26 = vadd.f32 %v1276_v21, %v1206_v20  ;;  %v1358_v27 = vadd.f32 %v1354_v25, %v1287_v22  ;;  %v3421_v29 = vpop.f32.mrb[25].mxu0  ;;  %v3432_v30 = vpop.f32.mrb[25].mxu1 }
 0x3ee   :  { %v3034_v34 = vmul.f32 -1.442695, %v1280_v26  ;;  %v3036_v35 = vmul.f32 -1.442695, %v1358_v27 }
 0x3f0   :  { %3887 = vpow2.f32 %v3034_v34 }
 0x3f1   :  { %3889 = vpow2.f32 %v3036_v35 }
 0x3f3   :  { %v1432_v36 = vpop.f32.mrb[26].mxu0  ;;  %v1505_v38 = vpop.f32.mrb[26].mxu1 }
 0x3f4   :  { %v1509_v39 = vadd.f32 %v1505_v38, %v1438_v37  ;;  %v3443_v40 = vpop.f32.mrb[27].mxu0  ;;  %v3454_v41 = vpop.f32.mrb[27].mxu1  ;;  %v1436_v44 = vadd.f32 %v1432_v36, %v1365_v42  ;;  %v1917_v42 = vld [vmem:[#allocation2 + $0x68] sm:$0xff] }
 0x3f5   :  { %v1836_v40 = vld [vmem:[#allocation2 + $0x28] sm:$0xff] }
 0x3f6   :  { %v3039_v43 = vmul.f32 -1.442695, %v1509_v39 }
 0x3f8   :  { %3891 = vpow2.f32 %v3039_v43 }
 0x3f9   :  { %3893 = vtanh.f32 %v1436_v44 }
 0x3fa   :  { %v3888_v45 = vpop.eup %3887 }
 0x3fb   :  { %v3890_v46 = vpop.eup %3889  ;;  %v1284_v47 = vadd.f32 1.0, %v3888_v45 }
 0x3fc   :  { %v1362_v48 = vadd.f32 1.0, %v3890_v46 }
 0x3fd   :  { %3895 = vrcp.f32 %v1284_v47 }
 0x3fe   :  { %3897 = vrcp.f32 %v1362_v48 }
 0x402   :  { %v3892_v49 = vpop.eup %3891 }
 0x403   :  { %v3894_v50 = vpop.eup %3893  ;;  %v1513_v54 = vadd.f32 1.0, %v3892_v49 }
 0x405   :  { %3899 = vrcp.f32 %v1513_v54 }
 0x407   :  { %v3896_v51 = vpop.eup %3895 }
 0x408   :  { %v3898_v52 = vpop.eup %3897  ;;  %v1517_v53 = vmul.f32 %v3896_v51, %v3894_v50  ;;  %v2068_v51 = vld [vmem:[#allocation2 + $0xe8] sm:$0xff] }
 0x409   :  { %v1516_v55 = vmul.f32 %v3898_v52, %v4288_v16  ;;  %v1680_v16 = vld [vmem:[#allocation2 + $0xa0] sm:$0xff] }
 0x40b   :  { %v4320_v56 = vadd.f32 %v1517_v53, %v1516_v55 }
 0x40d   :  { %3901 = vtanh.f32 %v4320_v56 }
 0x40f   :  { %v3900_v57 = vpop.eup %3899 }
 0x417   :  { %v3902_v58 = vpop.eup %3901 }
 0x418   :  { %v1520_v59 = vmul.f32 %v3902_v58, %v3900_v57 }
 0x41a   :  { %3464 = vmatmul.mubr.msk.f32.vlgmr.msra.gmra.mrb[28].mxu0 %vm163_vm2, %v1520_v59  ;;  %3475 = vmatmul.mubr.msk.f32.vlgmr.msra.gmra.mrb[28].mxu1 %vm163_vm2, %v1520_v59 }
 0x41b   :  { %3749 = vmatpush3.bf16.msra.mxu0 %v4207_v61  ;;  %3755 = vmatpush3.bf16.msra.mxu1 %v4209_v62 }
 0x41c   :  { %3750 = vmatprep.subr.bf16.mxu0 %v3993_v23  ;;  %3756 = vmatprep.subr.bf16.mxu1 %v3993_v23 }
 0x41d   :  { %3485 = vmatprep.mubr.msk.f32.mxu0 %vm3994_vm1, %v3995_v31  ;;  %3496 = vmatprep.mubr.msk.f32.mxu1 %vm3994_vm1, %v3995_v31 }
 0x41f   :  { %3752 = vmatpush3.bf16.msra.mxu0 %v4227_v4  ;;  %3758 = vmatpush3.bf16.msra.mxu1 %v4229_v5 }
 0x420   :  { %3759 = vmatprep.subr.bf16.mxu0 %v3993_v23  ;;  %3765 = vmatprep.subr.bf16.mxu1 %v3993_v23 }
 0x422   :  { %3486 = vmatmul.mubr.msk.f32.vlgmr.msra.gmra.mrb[30].mxu0 %vm163_vm2, %v1520_v59  ;;  %3497 = vmatmul.mubr.msk.f32.vlgmr.msra.gmra.mrb[30].mxu1 %vm163_vm2, %v1520_v59 }
 0x423   :  { %3761 = vmatpush3.bf16.msra.mxu0 %v4114_v24  ;;  %3767 = vmatpush3.bf16.msra.mxu1 %v4125_v28 }
 0x424   :  { %3762 = vmatprep.subr.bf16.mxu0 %v3993_v23  ;;  %3768 = vmatprep.subr.bf16.mxu1 %v3993_v23 }
 0x425   :  { %3507 = vmatprep.mubr.msk.f32.mxu0 %vm3994_vm1, %v3995_v31  ;;  %3518 = vmatprep.mubr.msk.f32.mxu1 %vm3994_vm1, %v3995_v31 }
 0x427   :  { %3764 = vmatpush3.bf16.msra.mxu0 %v4138_v32  ;;  %3770 = vmatpush3.bf16.msra.mxu1 %v4142_v33 }
 0x428   :  { %3771 = vmatprep.subr.bf16.mxu0 %v3993_v23  ;;  %3777 = vmatprep.subr.bf16.mxu1 %v3993_v23 }
 0x4ed   :  { %v1591_v63 = vpop.f32.mrb[28].mxu0  ;;  %v1669_v1 = vpop.f32.mrb[28].mxu1 }
 0x4ee   :  { %v1595_v2 = vadd.f32 %v1591_v63, %v1521_v60  ;;  %v1673_v3 = vadd.f32 %v1669_v1, %v1602_v0  ;;  %v3465_v6 = vpop.f32.mrb[29].mxu0  ;;  %v3476_v7 = vpop.f32.mrb[29].mxu1 }
 0x4f0   :  { %v3041_v8 = vmul.f32 -1.442695, %v1595_v2  ;;  %v3043_v9 = vmul.f32 -1.442695, %v1673_v3 }
 0x4f2   :  { %3903 = vpow2.f32 %v3041_v8 }
 0x4f3   :  { %3905 = vpow2.f32 %v3043_v9 }
 0x4f5   :  { %v1747_v10 = vpop.f32.mrb[30].mxu0  ;;  %v1820_v12 = vpop.f32.mrb[30].mxu1 }
 0x4f6   :  { %v1824_v13 = vadd.f32 %v1820_v12, %v1753_v11  ;;  %v3487_v14 = vpop.f32.mrb[31].mxu0  ;;  %v3498_v15 = vpop.f32.mrb[31].mxu1  ;;  %v1751_v18 = vadd.f32 %v1747_v10, %v1680_v16 }
 0x4f7   :  { %v2232_v14 = vld [vmem:[#allocation2 + $0x70] sm:$0xff] }
 0x4f8   :  { %v3046_v17 = vmul.f32 -1.442695, %v1824_v13 }
 0x4fa   :  { %3907 = vpow2.f32 %v3046_v17 }
 0x4fb   :  { %3909 = vtanh.f32 %v1751_v18 }
 0x4fc   :  { %v3904_v19 = vpop.eup %3903 }
 0x4fd   :  { %v3906_v20 = vpop.eup %3905  ;;  %v1599_v21 = vadd.f32 1.0, %v3904_v19 }
 0x4fe   :  { %v1677_v22 = vadd.f32 1.0, %v3906_v20 }
 0x4ff   :  { %3911 = vrcp.f32 %v1599_v21 }
 0x500   :  { %3913 = vrcp.f32 %v1677_v22 }
 0x504   :  { %v3908_v25 = vpop.eup %3907 }
 0x505   :  { %v3910_v26 = vpop.eup %3909  ;;  %v1828_v34 = vadd.f32 1.0, %v3908_v25 }
 0x507   :  { %3915 = vrcp.f32 %v1828_v34 }
 0x509   :  { %v3912_v27 = vpop.eup %3911 }
 0x50a   :  { %v3914_v29 = vpop.eup %3913  ;;  %v1832_v30 = vmul.f32 %v3912_v27, %v3910_v26 }
 0x50b   :  { %v1831_v35 = vmul.f32 %v3914_v29, %v4320_v56  ;;  %v1995_v56 = vld [vmem:[#allocation2 + $0xa8] sm:$0xff]  ;;  %v2310_v29 = vld [vmem:[#allocation2 + $0xb0] sm:$0xff] }
 0x50d   :  { %v4352_v36 = vadd.f32 %v1832_v30, %v1831_v35 }
 0x50f   :  { %3917 = vtanh.f32 %v4352_v36 }
 0x511   :  { %v3916_v37 = vpop.eup %3915 }
 0x519   :  { %v3918_v38 = vpop.eup %3917 }
 0x51a   :  { %v1835_v39 = vmul.f32 %v3918_v38, %v3916_v37 }
 0x51c   :  { %3508 = vmatmul.mubr.msk.f32.vlgmr.msra.gmra.mrb[32].mxu0 %vm163_vm2, %v1835_v39  ;;  %3519 = vmatmul.mubr.msk.f32.vlgmr.msra.gmra.mrb[32].mxu1 %vm163_vm2, %v1835_v39 }
 0x51d   :  { %3773 = vmatpush3.bf16.msra.mxu0 %v4207_v61  ;;  %3779 = vmatpush3.bf16.msra.mxu1 %v4209_v62 }
 0x51e   :  { %3774 = vmatprep.subr.bf16.mxu0 %v3993_v23  ;;  %3780 = vmatprep.subr.bf16.mxu1 %v3993_v23 }
 0x51f   :  { %3529 = vmatprep.mubr.msk.f32.mxu0 %vm3994_vm1, %v3995_v31  ;;  %3540 = vmatprep.mubr.msk.f32.mxu1 %vm3994_vm1, %v3995_v31 }
 0x521   :  { %3776 = vmatpush3.bf16.msra.mxu0 %v4227_v4  ;;  %3782 = vmatpush3.bf16.msra.mxu1 %v4229_v5 }
 0x522   :  { %3783 = vmatprep.subr.bf16.mxu0 %v3993_v23  ;;  %3789 = vmatprep.subr.bf16.mxu1 %v3993_v23 }
 0x524   :  { %3530 = vmatmul.mubr.msk.f32.vlgmr.msra.gmra.mrb[34].mxu0 %vm163_vm2, %v1835_v39  ;;  %3541 = vmatmul.mubr.msk.f32.vlgmr.msra.gmra.mrb[34].mxu1 %vm163_vm2, %v1835_v39 }
 0x525   :  { %3785 = vmatpush3.bf16.msra.mxu0 %v4114_v24  ;;  %3791 = vmatpush3.bf16.msra.mxu1 %v4125_v28 }
 0x526   :  { %3786 = vmatprep.subr.bf16.mxu0 %v3993_v23  ;;  %3792 = vmatprep.subr.bf16.mxu1 %v3993_v23 }
 0x527   :  { %3551 = vmatprep.mubr.msk.f32.mxu0 %vm3994_vm1, %v3995_v31  ;;  %3562 = vmatprep.mubr.msk.f32.mxu1 %vm3994_vm1, %v3995_v31 }
 0x529   :  { %3788 = vmatpush3.bf16.msra.mxu0 %v4138_v32  ;;  %3794 = vmatpush3.bf16.msra.mxu1 %v4142_v33 }
 0x52a   :  { %3795 = vmatprep.subr.bf16.mxu0 %v3993_v23  ;;  %3801 = vmatprep.subr.bf16.mxu1 %v3993_v23 }
 0x5ef   :  { %v1906_v41 = vpop.f32.mrb[32].mxu0  ;;  %v1984_v43 = vpop.f32.mrb[32].mxu1 }
 0x5f0   :  { %v1910_v44 = vadd.f32 %v1906_v41, %v1836_v40  ;;  %v1988_v45 = vadd.f32 %v1984_v43, %v1917_v42  ;;  %v3509_v46 = vpop.f32.mrb[33].mxu0  ;;  %v3520_v47 = vpop.f32.mrb[33].mxu1 }
 0x5f2   :  { %v3048_v48 = vmul.f32 -1.442695, %v1910_v44  ;;  %v3050_v49 = vmul.f32 -1.442695, %v1988_v45 }
 0x5f4   :  { %3919 = vpow2.f32 %v3048_v48 }
 0x5f5   :  { %3921 = vpow2.f32 %v3050_v49 }
 0x5f7   :  { %v2062_v50 = vpop.f32.mrb[34].mxu0  ;;  %v2135_v52 = vpop.f32.mrb[34].mxu1 }
 0x5f8   :  { %v2139_v53 = vadd.f32 %v2135_v52, %v2068_v51  ;;  %v3531_v54 = vpop.f32.mrb[35].mxu0  ;;  %v3542_v55 = vpop.f32.mrb[35].mxu1  ;;  %v2066_v58 = vadd.f32 %v2062_v50, %v1995_v56  ;;  %v2784_v50 = vld [vmem:[%s4480_s3 + $0x38] sm:$0xff] }
 0x5fa   :  { %v3053_v57 = vmul.f32 -1.442695, %v2139_v53  ;;  %v2547_v53 = vld [vmem:[#allocation2 + $0x78] sm:$0xff] }
 0x5fc   :  { %3923 = vpow2.f32 %v3053_v57 }
 0x5fd   :  { %3925 = vtanh.f32 %v2066_v58 }
 0x5fe   :  { %v3920_v59 = vpop.eup %3919 }
 0x5ff   :  { %v3922_v60 = vpop.eup %3921  ;;  %v1914_v63 = vadd.f32 1.0, %v3920_v59 }
 0x600   :  { %v1992_v0 = vadd.f32 1.0, %v3922_v60 }
 0x601   :  { %3927 = vrcp.f32 %v1914_v63 }
 0x602   :  { %3929 = vrcp.f32 %v1992_v0  ;;  %v2698_v0 = vld [vmem:[#allocation2 + $0xf8] sm:$0xff] }
 0x606   :  { %v3924_v1 = vpop.eup %3923 }
 0x607   :  { %v3926_v2 = vpop.eup %3925  ;;  %v2143_v8 = vadd.f32 1.0, %v3924_v1 }
 0x609   :  { %3931 = vrcp.f32 %v2143_v8 }
 0x60b   :  { %v3928_v3 = vpop.eup %3927 }
 0x60c   :  { %v3930_v6 = vpop.eup %3929  ;;  %v2147_v7 = vmul.f32 %v3928_v3, %v3926_v2 }
 0x60d   :  { %v2146_v9 = vmul.f32 %v3930_v6, %v4352_v36 }
 0x60f   :  { %v4384_v10 = vadd.f32 %v2147_v7, %v2146_v9 }
 0x611   :  { %3933 = vtanh.f32 %v4384_v10 }
 0x613   :  { %v3932_v11 = vpop.eup %3931 }
 0x61b   :  { %v3934_v12 = vpop.eup %3933 }
 0x61c   :  { %v2150_v13 = vmul.f32 %v3934_v12, %v3932_v11 }
 0x61e   :  { %3552 = vmatmul.mubr.msk.f32.vlgmr.msra.gmra.mrb[36].mxu0 %vm163_vm2, %v2150_v13  ;;  %3563 = vmatmul.mubr.msk.f32.vlgmr.msra.gmra.mrb[36].mxu1 %vm163_vm2, %v2150_v13 }
 0x61f   :  { %3797 = vmatpush3.bf16.msra.mxu0 %v4207_v61  ;;  %3803 = vmatpush3.bf16.msra.mxu1 %v4209_v62 }
 0x620   :  { %3798 = vmatprep.subr.bf16.mxu0 %v3993_v23  ;;  %3804 = vmatprep.subr.bf16.mxu1 %v3993_v23 }
 0x621   :  { %3573 = vmatprep.mubr.msk.f32.mxu0 %vm3994_vm1, %v3995_v31  ;;  %3584 = vmatprep.mubr.msk.f32.mxu1 %vm3994_vm1, %v3995_v31 }
 0x623   :  { %3800 = vmatpush3.bf16.msra.mxu0 %v4227_v4  ;;  %3806 = vmatpush3.bf16.msra.mxu1 %v4229_v5 }
 0x624   :  { %3807 = vmatprep.subr.bf16.mxu0 %v3993_v23  ;;  %3813 = vmatprep.subr.bf16.mxu1 %v3993_v23 }
 0x626   :  { %3574 = vmatmul.mubr.msk.f32.vlgmr.msra.gmra.mrb[38].mxu0 %vm163_vm2, %v2150_v13  ;;  %3585 = vmatmul.mubr.msk.f32.vlgmr.msra.gmra.mrb[38].mxu1 %vm163_vm2, %v2150_v13 }
 0x627   :  { %3809 = vmatpush3.bf16.msra.mxu0 %v4114_v24  ;;  %3815 = vmatpush3.bf16.msra.mxu1 %v4125_v28  ;;  %v2151_v24 = vld [vmem:[#allocation2 + $0x30] sm:$0xff] }
 0x628   :  { %3810 = vmatprep.subr.bf16.mxu0 %v3993_v23  ;;  %3816 = vmatprep.subr.bf16.mxu1 %v3993_v23 }
 0x629   :  { %3595 = vmatprep.mubr.msk.f32.mxu0 %vm3994_vm1, %v3995_v31  ;;  %3606 = vmatprep.mubr.msk.f32.mxu1 %vm3994_vm1, %v3995_v31 }
 0x62b   :  { %3812 = vmatpush3.bf16.msra.mxu0 %v4138_v32  ;;  %3818 = vmatpush3.bf16.msra.mxu1 %v4142_v33  ;;  %v2383_v32 = vld [vmem:[#allocation2 + $0xf0] sm:$0xff] }
 0x62c   :  { %3819 = vmatprep.subr.bf16.mxu0 %v3993_v23  ;;  %3825 = vmatprep.subr.bf16.mxu1 %v3993_v23 }
 0x6f1   :  { %v2221_v28 = vpop.f32.mrb[36].mxu0  ;;  %v2299_v15 = vpop.f32.mrb[36].mxu1 }
 0x6f2   :  { %v2225_v16 = vadd.f32 %v2221_v28, %v2151_v24  ;;  %v2303_v17 = vadd.f32 %v2299_v15, %v2232_v14  ;;  %v3553_v18 = vpop.f32.mrb[37].mxu0  ;;  %v3564_v19 = vpop.f32.mrb[37].mxu1 }
 0x6f4   :  { %v3055_v20 = vmul.f32 -1.442695, %v2225_v16  ;;  %v3057_v21 = vmul.f32 -1.442695, %v2303_v17 }
 0x6f6   :  { %3935 = vpow2.f32 %v3055_v20 }
 0x6f7   :  { %3937 = vpow2.f32 %v3057_v21 }
 0x6f9   :  { %v2377_v22 = vpop.f32.mrb[38].mxu0  ;;  %v2450_v25 = vpop.f32.mrb[38].mxu1 }
 0x6fa   :  { %v2454_v33 = vadd.f32 %v2450_v25, %v2383_v32  ;;  %v3575_v26 = vpop.f32.mrb[39].mxu0  ;;  %v3586_v27 = vpop.f32.mrb[39].mxu1  ;;  %v2381_v34 = vadd.f32 %v2377_v22, %v2310_v29  ;;  %v2787_v22 = vld [vmem:[%s4480_s3 + $0x50] sm:$0x1]  ;;  %v3996_v32 = vmov 0  }
 0x6fb   :  { %3842 = vset.pattern.permute.xlu0 %v3996_v32  ;;  %v3068_v25 = vld [vmem:[%s4480_s3 + $0x40] ss:$0 sm:$0xff] }
 0x6fc   :  { %v3060_v30 = vmul.f32 -1.442695, %v2454_v33  ;;  %2868 = vperm.xlu0 %3842, %v2787_v22  }
 0x6fe   :  { %3939 = vpow2.f32 %v3060_v30  ;;  %v2786_v30 = vld [vmem:[%s4480_s3 + $0x48] sm:$0x1] }
 0x6ff   :  { %3941 = vtanh.f32 %v2381_v34 }
 0x700   :  { %v3936_v35 = vpop.eup %3935 }
 0x701   :  { %v3938_v36 = vpop.eup %3937  ;;  %v2229_v37 = vadd.f32 1.0, %v3936_v35 }
 0x702   :  { %v2307_v38 = vadd.f32 1.0, %v3938_v36 }
 0x703   :  { %3943 = vrcp.f32 %v2229_v37 }
 0x704   :  { %3945 = vrcp.f32 %v2307_v38 }
 0x708   :  { %v3940_v39 = vpop.eup %3939 }
 0x709   :  { %v3942_v40 = vpop.eup %3941  ;;  %v2458_v44 = vadd.f32 1.0, %v3940_v39 }
 0x70b   :  { %3947 = vrcp.f32 %v2458_v44 }
 0x70d   :  { %v3944_v41 = vpop.eup %3943 }
 0x70e   :  { %v3946_v42 = vpop.eup %3945  ;;  %v2462_v43 = vmul.f32 %v3944_v41, %v3942_v40 }
 0x70f   :  { %v2461_v45 = vmul.f32 %v3946_v42, %v4384_v10 }
 0x711   :  { %v4416_v46 = vadd.f32 %v2462_v43, %v2461_v45 }
 0x713   :  { %3949 = vtanh.f32 %v4416_v46 }
 0x715   :  { %v3948_v47 = vpop.eup %3947 }
 0x71d   :  { %v3950_v48 = vpop.eup %3949 }
 0x71e   :  { %v2465_v49 = vmul.f32 %v3950_v48, %v3948_v47 }
 0x720   :  { %3596 = vmatmul.mubr.msk.f32.vlgmr.msra.gmra.mrb[40].mxu0 %vm163_vm2, %v2465_v49  ;;  %3607 = vmatmul.mubr.msk.f32.vlgmr.msra.gmra.mrb[40].mxu1 %vm163_vm2, %v2465_v49 }
 0x721   :  { %3821 = vmatpush3.bf16.msra.mxu0 %v4207_v61  ;;  %3827 = vmatpush3.bf16.msra.mxu1 %v4209_v62  ;;  %v2781_v61 = vld [vmem:[%s4480_s3 + $0x20] sm:$0xff]  ;;  %v2782_v62 = vld [vmem:[%s4480_s3 + $0x28] sm:$0xff] }
 0x722   :  { %3822 = vmatprep.subr.bf16.mxu0 %v3993_v23  ;;  %3828 = vmatprep.subr.bf16.mxu1 %v3993_v23 }
 0x723   :  { %3617 = vmatprep.mubr.msk.f32.mxu0 %vm3994_vm1, %v3995_v31  ;;  %3628 = vmatprep.mubr.msk.f32.mxu1 %vm3994_vm1, %v3995_v31 }
 0x725   :  { %3824 = vmatpush3.bf16.msra.mxu0 %v4227_v4  ;;  %3830 = vmatpush3.bf16.msra.mxu1 %v4229_v5  ;;  %v2783_v4 = vld [vmem:[%s4480_s3 + $0x30] sm:$0xff]  ;;  %v3832_v5 = vpack.c.bf16 %v2782_v62, %v2781_v61 }
 0x726   :  { %3831 = vmatprep.subr.bf16.mxu0 %v3993_v23  ;;  %3642 = vmatprep.subr.mxu1 %v3995_v31  ;;  %v3835_v51 = vpack.c.bf16 %v2784_v50, %v2783_v4 }
 0x728   :  { %3618 = vmatmul.mubr.msk.f32.vlgmr.msra.gmra.mrb[42].mxu0 %vm163_vm2, %v2465_v49  ;;  %3629 = vmatmul.mubr.msk.f32.vlgmr.msra.gmra.mrb[42].mxu1 %vm163_vm2, %v2465_v49 }
 0x729   :  { %3639 = vmatprep.mubr.msk.f32.mxu0 %vm3994_vm1, %v3995_v31  ;;  %3644 = vmatprep.mubr.msk.f32.mxu1 %vm3994_vm1, %v3995_v31  ;;  %v2466_v31 = vld [vmem:[#allocation2 + $0x38] sm:$0xff] }
 0x72a   :  { %3833 = vmatpush3.bf16.msra.mxu0 %v3832_v5 }
 0x72b   :  { %3834 = vmatprep.subr.bf16.mxu0 %v3993_v23  ;;  %v2625_v23 = vld [vmem:[#allocation2 + $0xb8] sm:$0xff] }
 0x72e   :  { %3836 = vmatpush3.bf16.msra.mxu0 %v3835_v51 }
 0x77b   :  { %v2869_v34 = vpop.permute.xlu0 %2868 }
 0x7f3   :  { %v2536_v52 = vpop.f32.mrb[40].mxu0  ;;  %v2614_v54 = vpop.f32.mrb[40].mxu1 }
 0x7f4   :  { %v2540_v55 = vadd.f32 %v2536_v52, %v2466_v31  ;;  %v2618_v56 = vadd.f32 %v2614_v54, %v2547_v53  ;;  %v3597_v57 = vpop.f32.mrb[41].mxu0  ;;  %v3608_v58 = vpop.f32.mrb[41].mxu1 }
 0x7f6   :  { %v3062_v59 = vmul.f32 -1.442695, %v2540_v55  ;;  %v3064_v60 = vmul.f32 -1.442695, %v2618_v56 }
 0x7f8   :  { %3951 = vpow2.f32 %v3062_v59 }
 0x7f9   :  { %3953 = vpow2.f32 %v3064_v60 }
 0x7fb   :  { %v2692_v63 = vpop.f32.mrb[42].mxu0  ;;  %v2765_v1 = vpop.f32.mrb[42].mxu1 }
 0x7fc   :  { %v2769_v2 = vadd.f32 %v2765_v1, %v2698_v0  ;;  %v3619_v3 = vpop.f32.mrb[43].mxu0  ;;  %v3630_v6 = vpop.f32.mrb[43].mxu1  ;;  %v2696_v8 = vadd.f32 %v2692_v63, %v2625_v23 }
 0x7fe   :  { %v3067_v7 = vmul.f32 -1.442695, %v2769_v2 }
 0x800   :  { %3955 = vpow2.f32 %v3067_v7 }
 0x801   :  { %3957 = vtanh.f32 %v2696_v8 }
 0x802   :  { %v3952_v9 = vpop.eup %3951 }
 0x803   :  { %v3954_v10 = vpop.eup %3953  ;;  %v2544_v11 = vadd.f32 1.0, %v3952_v9 }
 0x804   :  { %v2622_v12 = vadd.f32 1.0, %v3954_v10 }
 0x805   :  { %3959 = vrcp.f32 %v2544_v11 }
 0x806   :  { %3961 = vrcp.f32 %v2622_v12 }
 0x80a   :  { %v3956_v13 = vpop.eup %3955 }
 0x80b   :  { %v3958_v24 = vpop.eup %3957  ;;  %v2773_v16 = vadd.f32 1.0, %v3956_v13 }
 0x80d   :  { %3963 = vrcp.f32 %v2773_v16 }
 0x80f   :  { %v3960_v28 = vpop.eup %3959 }
 0x810   :  { %v3962_v14 = vpop.eup %3961  ;;  %v2777_v15 = vmul.f32 %v3960_v28, %v3958_v24 }
 0x811   :  { %v2776_v17 = vmul.f32 %v3962_v14, %v4416_v46 }
 0x813   :  { %v2778_v18 = vadd.f32 %v2777_v15, %v2776_v17 }
 0x815   :  { %3965 = vtanh.f32 %v2778_v18 }
 0x817   :  { %v3964_v19 = vpop.eup %3963 }
 0x81f   :  { %v3966_v20 = vpop.eup %3965 }
 0x820   :  { %v2780_v21 = vmul.f32 %v3966_v20, %v3964_v19 }
 0x822   :  { %3640 = vmatmul.mubr.msk.f32.vlgmr.msra.gmra.mrb[44].mxu0 %vm163_vm2, %v2780_v21 }
 0x8f5   :  { %v2861_v33 = vpop.f32.mrb[44].mxu0 }
 0x8f6   :  { %v2862_v26 = vadd.f32 %v3068_v25, %v2861_v33  ;;  %v3641_v27 = vpop.f32.mrb[45].mxu0 }
 0x8f8   :  { %3967 = vtanh.f32 %v2862_v26 }
 0x902   :  { %v3968_v29 = vpop.eup %3967 }
 0x903   :  { %3643 = vmatpush3.xpose.msk.msra.mxu1 %vm33_vm0, %v3968_v29 }
 0x906   :  { %3645 = vmatmul.mubr.msk.f32.vlgmr.msra.gmra.mrb[44].mxu1 %vm33_vm0, %v2786_v30 }
 0x9d9   :  { %v2943_v35 = vpop.f32.mrb[44].mxu1 }
 0x9da   :  { %v2944_v36 = vadd.f32 %v2943_v35, %v2869_v34  ;;  %v3646_v37 = vpop.f32.mrb[45].mxu1 }
 0x9dc   :  { %2948 = vst.msk [vmem:[#allocation3] sm:$0x1] %vm2947_vm3, %v2944_v36 }
 0x9dd   :  { %3980 = shalt.err (!%p3977_p4)
}
 0x9de   :  { %s3981_s21 = scalar_lea.hbm %s4481_s4, 16 }
 0x9df   :  { %p3982_p5 = scmp.ne.s32.totalorder %s4481_s4, %s3981_s21  ;;  %p3985_p6 = scmp.lt.u32.totalorder %s3981_s21, %s4481_s4 }
 0x9e1   :  { %p3987_p7 = pnand %p3985_p6, %p3982_p5 }
 0x9e3   :  { %3990 = shalt.err (!%p3987_p7)
}
 0x9e4   :  { %2958 = dma.vmem_to_hbm [thread:$0]  %s2956_s18, 16, %s4481_s4, [#allocation4]  }
 0x9e5   :  { %3991 = dma.done.wait [#allocation4], 16  }
 0x9e6   :  { %3992 = vsyncadd [#allocation4], 4294967280 }
 0x9e7   :  { %2962 = vsyncpa [#allocation4], 1 }

</bundles_post_ra>
